<compile_context>
chip_gen: v6e
topology: v6e:2x2x1
jax: 0.10.0
libtpu: 0.0.40
codegen_flags: <defaults>
</compile_context>

<pallas_src>
import math

import jax
import jax.numpy as jnp
import numpy as np
from jax.experimental import pallas as pl
from jax.experimental.pallas import tpu as pltpu

# --- small, TPU-friendly hyperparameters consistent with the module's __init__ ---
B = 2          # batch
S = 8          # sequence length
D = 128        # d_model
H = 4          # num_heads  (D % H == 0)
F = 256        # d_ff
DK = D // H
LN_EPS = 1e-5  # PyTorch nn.LayerNorm default


def _num_tensorcores():
    """Trace-time TC-count guess used only to pick the grid shape."""
    try:
        kind = jax.devices()[0].device_kind.lower()
    except Exception:
        return 1
    # v7x exposes 2 TensorCores per chip; v4 megacore also benefits from a parallel grid.
    if "v7" in kind or "7x" in kind or "v4" in kind:
        return 2
    return 1  # v5e / v6e: single TensorCore


def _make_kernel(nb):
    """Kernel processing `nb` batches' rows (nb*S, D) per grid step."""
    rows = nb * S
    n = nb * H  # number of (batch, head) attention blocks, head-major: idx = h*nb + b

    def kernel(x_ref, mask_ref, wqkv_ref, bqkv_ref, wo_ref,
               w1_ref, b1_ref, w2_ref, pvec_ref, o_ref):
        x = x_ref[...]                      # (rows, D) f32
        mask = mask_ref[...]                # (nb, S, S) f32 (1 = keep, 0 = masked)

        # packed per-row vectors: [bo, b2, g1, be1, g2, be2, pad, pad]
        pvec = pvec_ref[...]                # (8, D) f32
        bo, b2 = pvec[0:1], pvec[1:2]
        g1, be1 = pvec[2:3], pvec[3:4]
        g2, be2 = pvec[4:5], pvec[5:6]

        x_bf = x.astype(jnp.bfloat16)

        # --- fused Q/K/V projection (1/sqrt(DK) scale pre-folded into the Q columns) ---
        qkv = jnp.dot(x_bf, wqkv_ref[...],
                      preferred_element_type=jnp.float32) + bqkv_ref[...]   # (rows, 3D) f32
        qkv_bf = qkv.astype(jnp.bfloat16)

        # --- build head-major (n, S, DK) operands from static lane slices ---
        # index order: n = h*nb + b  (head-major), so each head later collapses back to
        # (rows, DK) with rows ordered (b, s) for the W_o accumulation.
        def heads(off):
            return jnp.concatenate(
                [qkv_bf[:, off + h * DK: off + (h + 1) * DK] for h in range(H)],
                axis=0).reshape(n, S, DK)

        qh = heads(0)            # (n, S, DK) bf16, already scaled
        kh = heads(D)
        vh = heads(2 * D)

        # --- attention: leading batch dim on both einsums, no implicit transposes ---
        scores = jnp.einsum('nqd,nkd->nqk', qh, kh,
                            preferred_element_type=jnp.float32)             # (n, S, S)
        amask = (mask - 1.0) * 1e9                                          # (nb, S, S) additive
        amask_n = jnp.concatenate([amask] * H, axis=0)                      # (n, S, S), h-major
        scores = scores + amask_n
        scores = scores - jnp.max(scores, axis=-1, keepdims=True)
        p = jnp.exp(scores)
        p = p * pl.reciprocal(jnp.sum(p, axis=-1, keepdims=True), approx=True)

        ctx = jnp.einsum('nqk,nkd->nqd', p.astype(jnp.bfloat16), vh,
                         preferred_element_type=jnp.float32)                # (n, S, DK)
        ctx_bf = ctx.astype(jnp.bfloat16)

        # --- combine-heads folded into per-head row-slices of W_o (lane-dense outputs) ---
        wo = wo_ref[...]                                                    # (D, D) bf16
        acc = None
        for h in range(H):
            if nb == 1:
                ctx_h = ctx_bf[h]                                           # (S, DK)
            else:
                ctx_h = jnp.concatenate([ctx_bf[h * nb + b] for b in range(nb)],
                                        axis=0)                             # (rows, DK)
            term = jnp.dot(ctx_h, wo[h * DK:(h + 1) * DK, :],
                           preferred_element_type=jnp.float32)              # (rows, D) f32
            acc = term if acc is None else acc + term
        attn = acc + bo

        # --- residual + LayerNorm 1 (f32 math) ---
        y = x + attn
        mu = jnp.mean(y, axis=-1, keepdims=True)
        var = jnp.mean((y - mu) ** 2, axis=-1, keepdims=True)
        y = (y - mu) * jax.lax.rsqrt(var + LN_EPS) * g1 + be1

        # --- position-wise feed-forward (bf16 MXU inputs, f32 accumulation) ---
        h1 = jnp.dot(y.astype(jnp.bfloat16), w1_ref[...],
                     preferred_element_type=jnp.float32) + b1_ref[...]
        h1 = jnp.maximum(h1, 0.0)
        ff = jnp.dot(h1.astype(jnp.bfloat16), w2_ref[...],
                     preferred_element_type=jnp.float32) + b2

        # --- residual + LayerNorm 2 (f32 math) ---
        z = y + ff
        mu2 = jnp.mean(z, axis=-1, keepdims=True)
        var2 = jnp.mean((z - mu2) ** 2, axis=-1, keepdims=True)
        z = (z - mu2) * jax.lax.rsqrt(var2 + LN_EPS) * g2 + be2

        o_ref[...] = z.astype(o_ref.dtype)

    return kernel


def pack_params(params):
    """ONE-TIME parameter packing (do NOT call per forward): fuse QKV, fold the attention
    scale into the Q columns / bias, cast weights to bf16, pack small per-row vectors."""
    (wq, bq, wk, bk, wv, bv, wo, bo, w1, b1, w2, b2, g1, be1, g2, be2) = params
    scale = 1.0 / math.sqrt(DK)
    wqkv = jnp.concatenate([wq * scale, wk, wv], axis=1).astype(jnp.bfloat16)   # (D, 3D)
    bqkv = jnp.concatenate([bq * scale, bk, bv], axis=1)                        # (1, 3D) f32
    pvec = jnp.concatenate(
        [bo, b2, g1, be1, g2, be2, jnp.zeros((2, D), jnp.float32)], axis=0)     # (8, D) f32
    return (wqkv, bqkv, wo.astype(jnp.bfloat16), w1.astype(jnp.bfloat16), b1,
            w2.astype(jnp.bfloat16), pvec)


def encoder_layer(x, mask, packed):
    """Forward pass. `packed` comes from pack_params() (computed once, outside this call)."""
    (wqkv, bqkv, wo_bf, w1_bf, b1, w2_bf, pvec) = packed

    # Grid choice per chip generation: parallel over batch on multi-TC chips (v7x),
    # collapse batch into the matmul M dim on single-TC chips (v5e / v6e).
    nb = 1 if _num_tensorcores() >= 2 else B
    steps = B // nb

    x2 = x.reshape(B * S, D)   # leading-dim merge: free

    const = lambda shape: pl.BlockSpec(shape, lambda i, _s=shape: (0,) * len(_s))

    out = pl.pallas_call(
        _make_kernel(nb),
        out_shape=jax.ShapeDtypeStruct((B * S, D), jnp.float32),
        grid=(steps,),
        in_specs=[
            pl.BlockSpec((nb * S, D), lambda i: (i, 0)),     # x rows
            pl.BlockSpec((nb, S, S), lambda i: (i, 0, 0)),   # raw mask (1 keep / 0 masked)
            const((D, 3 * D)),                               # fused, pre-scaled W_qkv (bf16)
            const((1, 3 * D)),                               # fused b_qkv (f32)
            const((D, D)),                                   # W_o (bf16)
            const((D, F)),                                   # fc1 W (bf16)
            const((1, F)),                                   # fc1 b (f32)
            const((F, D)),                                   # fc2 W (bf16)
            const((8, D)),                                   # packed [bo,b2,g1,be1,g2,be2]
        ],
        out_specs=pl.BlockSpec((nb * S, D), lambda i: (i, 0)),
        compiler_params=pltpu.CompilerParams(
            dimension_semantics=("parallel",)),
    )(x2, mask, wqkv, bqkv, wo_bf, w1_bf, b1, w2_bf, pvec)

    return out.reshape(B, S, D)


def reference(x, mask, params):
    """Pure-JAX reference replicating the PyTorch forward (eval mode, f32)."""
    (wq, bq, wk, bk, wv, bv, wo, bo, w1, b1, w2, b2, g1, be1, g2, be2) = params

    def split_heads(t):  # (B, S, D) -> (B, H, S, DK)
        return t.reshape(B, S, H, DK).transpose(0, 2, 1, 3)

    q = split_heads(x @ wq + bq)
    k = split_heads(x @ wk + bk)
    v = split_heads(x @ wv + bv)
    scores = jnp.einsum("bhqd,bhkd->bhqk", q, k) / math.sqrt(DK)
    scores = jnp.where(mask[:, None, :, :] == 0, -1e9, scores)
    p = jax.nn.softmax(scores, axis=-1)
    ctx = jnp.einsum("bhqk,bhkd->bhqd", p, v).transpose(0, 2, 1, 3).reshape(B, S, D)
    attn = ctx @ wo + bo

    def ln(t, g, b):
        mu = jnp.mean(t, axis=-1, keepdims=True)
        var = jnp.mean((t - mu) ** 2, axis=-1, keepdims=True)
        return (t - mu) * jax.lax.rsqrt(var + LN_EPS) * g + b

    y = ln(x + attn, g1, be1)
    ff = jnp.maximum(y @ w1 + b1, 0.0) @ w2 + b2
    return ln(y + ff, g2, be2)


def make_params(key):
    keys = jax.random.split(key, 12)
    s = 0.02
    wq = s * jax.random.normal(keys[0], (D, D), jnp.float32)
    wk = s * jax.random.normal(keys[1], (D, D), jnp.float32)
    wv = s * jax.random.normal(keys[2], (D, D), jnp.float32)
    wo = s * jax.random.normal(keys[3], (D, D), jnp.float32)
    bq = s * jax.random.normal(keys[4], (1, D), jnp.float32)
    bk = s * jax.random.normal(keys[5], (1, D), jnp.float32)
    bv = s * jax.random.normal(keys[6], (1, D), jnp.float32)
    bo = s * jax.random.normal(keys[7], (1, D), jnp.float32)
    w1 = s * jax.random.normal(keys[8], (D, F), jnp.float32)
    b1 = s * jax.random.normal(keys[9], (1, F), jnp.float32)
    w2 = s * jax.random.normal(keys[10], (F, D), jnp.float32)
    b2 = s * jax.random.normal(keys[11], (1, D), jnp.float32)
    # LayerNorm affine params: PyTorch default init (ones / zeros)
    g1 = jnp.ones((1, D), jnp.float32)
    be1 = jnp.zeros((1, D), jnp.float32)
    g2 = jnp.ones((1, D), jnp.float32)
    be2 = jnp.zeros((1, D), jnp.float32)
    return (wq, bq, wk, bk, wv, bv, wo, bo, w1, b1, w2, b2, g1, be1, g2, be2)


if __name__ == "__main__":
    key = jax.random.PRNGKey(0)
    kx, kp = jax.random.split(key)

    x = jax.random.normal(kx, (B, S, D), jnp.float32)
    # causal mask (1 = keep, 0 = mask), broadcast over heads like the PyTorch module
    mask = jnp.tril(jnp.ones((S, S), jnp.float32))[None, :, :].repeat(B, axis=0)
    params = make_params(kp)

    # One-time parameter packing (init-time cost, NOT in the per-call forward path).
    packed = pack_params(params)
    packed = tuple(jax.block_until_ready(p) for p in packed)

    fwd = jax.jit(encoder_layer)
    out = jax.block_until_ready(fwd(x, mask, packed))

    ref = reference(x, mask, params)
    np.testing.assert_allclose(np.asarray(out), np.asarray(ref), rtol=1e-2, atol=1e-2)

    print("KERNEL_OK")
</pallas_src>

<mosaic_0001>
module attributes {stable_mosaic.version = 11 : i64} {
  func.func @kernel(%arg0: i32, %arg1: memref<16x128xf32, #tpu.memory_space<vmem>>, %arg2: memref<2x8x8xf32, #tpu.memory_space<vmem>>, %arg3: memref<128x384xbf16, #tpu.memory_space<vmem>>, %arg4: memref<1x384xf32, #tpu.memory_space<vmem>>, %arg5: memref<128x128xbf16, #tpu.memory_space<vmem>>, %arg6: memref<128x256xbf16, #tpu.memory_space<vmem>>, %arg7: memref<1x256xf32, #tpu.memory_space<vmem>>, %arg8: memref<256x128xbf16, #tpu.memory_space<vmem>>, %arg9: memref<8x128xf32, #tpu.memory_space<vmem>>, %arg10: memref<16x128xf32, #tpu.memory_space<vmem>>) attributes {dimension_semantics = [#tpu.dimension_semantics<parallel>], iteration_bounds = array<i64: 1>, scalar_prefetch = 0 : i64, scratch_operands = 0 : i64, tpu.core_type = #tpu.core_type<tc>, window_params = [{transform_indices = @transform_0, window_bounds = array<i64: 16, 128>}, {transform_indices = @transform_1, window_bounds = array<i64: 2, 8, 8>}, {pipeline_mode = #tpu.pipeline_mode<synchronous>, transform_indices = @transform_2, window_bounds = array<i64: 128, 384>}, {pipeline_mode = #tpu.pipeline_mode<synchronous>, transform_indices = @transform_3, window_bounds = array<i64: 1, 384>}, {pipeline_mode = #tpu.pipeline_mode<synchronous>, transform_indices = @transform_4, window_bounds = array<i64: 128, 128>}, {pipeline_mode = #tpu.pipeline_mode<synchronous>, transform_indices = @transform_5, window_bounds = array<i64: 128, 256>}, {pipeline_mode = #tpu.pipeline_mode<synchronous>, transform_indices = @transform_6, window_bounds = array<i64: 1, 256>}, {pipeline_mode = #tpu.pipeline_mode<synchronous>, transform_indices = @transform_7, window_bounds = array<i64: 256, 128>}, {pipeline_mode = #tpu.pipeline_mode<synchronous>, transform_indices = @transform_8, window_bounds = array<i64: 8, 128>}, {transform_indices = @transform_9, window_bounds = array<i64: 16, 128>}]} {
    %c0 = arith.constant 0 : index
    %c0_0 = arith.constant 0 : index
    %0 = vector.load %arg1[%c0, %c0_0] : memref<16x128xf32, #tpu.memory_space<vmem>>, vector<16x128xf32>
    %c0_1 = arith.constant 0 : index
    %c0_2 = arith.constant 0 : index
    %c0_3 = arith.constant 0 : index
    %1 = vector.load %arg2[%c0_1, %c0_2, %c0_3] : memref<2x8x8xf32, #tpu.memory_space<vmem>>, vector<2x8x8xf32>
    %c0_4 = arith.constant 0 : index
    %c0_5 = arith.constant 0 : index
    %2 = vector.load %arg9[%c0_4, %c0_5] : memref<8x128xf32, #tpu.memory_space<vmem>>, vector<8x128xf32>
    %3 = vector.extract_strided_slice %2 {offsets = [0, 0], sizes = [1, 128], strides = [1, 1]} : vector<8x128xf32> to vector<1x128xf32>
    %4 = vector.extract_strided_slice %2 {offsets = [1, 0], sizes = [1, 128], strides = [1, 1]} : vector<8x128xf32> to vector<1x128xf32>
    %5 = vector.extract_strided_slice %2 {offsets = [2, 0], sizes = [1, 128], strides = [1, 1]} : vector<8x128xf32> to vector<1x128xf32>
    %6 = vector.extract_strided_slice %2 {offsets = [3, 0], sizes = [1, 128], strides = [1, 1]} : vector<8x128xf32> to vector<1x128xf32>
    %7 = vector.extract_strided_slice %2 {offsets = [4, 0], sizes = [1, 128], strides = [1, 1]} : vector<8x128xf32> to vector<1x128xf32>
    %8 = vector.extract_strided_slice %2 {offsets = [5, 0], sizes = [1, 128], strides = [1, 1]} : vector<8x128xf32> to vector<1x128xf32>
    %9 = arith.truncf %0 : vector<16x128xf32> to vector<16x128xbf16>
    %c0_6 = arith.constant 0 : index
    %c0_7 = arith.constant 0 : index
    %10 = vector.load %arg3[%c0_6, %c0_7] : memref<128x384xbf16, #tpu.memory_space<vmem>>, vector<128x384xbf16>
    %cst = arith.constant dense<0.000000e+00> : vector<16x384xf32>
    %11 = tpu.matmul %9, %10, %cst {dimension_numbers = #tpu.dot_dimension_numbers<[1], [0], [0], [1], [0, 0, 1, 1], [], []>} : vector<16x128xbf16>, vector<128x384xbf16>, vector<16x384xf32> -> vector<16x384xf32>
    %c0_8 = arith.constant 0 : index
    %c0_9 = arith.constant 0 : index
    %12 = vector.load %arg4[%c0_8, %c0_9] : memref<1x384xf32, #tpu.memory_space<vmem>>, vector<1x384xf32>
    %13 = vector.broadcast %12 : vector<1x384xf32> to vector<16x384xf32>
    %14 = arith.addf %11, %13 : vector<16x384xf32>
    %15 = arith.truncf %14 : vector<16x384xf32> to vector<16x384xbf16>
    %16 = vector.extract_strided_slice %15 {offsets = [0, 0], sizes = [16, 32], strides = [1, 1]} : vector<16x384xbf16> to vector<16x32xbf16>
    %17 = vector.extract_strided_slice %15 {offsets = [0, 32], sizes = [16, 32], strides = [1, 1]} : vector<16x384xbf16> to vector<16x32xbf16>
    %18 = vector.extract_strided_slice %15 {offsets = [0, 64], sizes = [16, 32], strides = [1, 1]} : vector<16x384xbf16> to vector<16x32xbf16>
    %19 = vector.extract_strided_slice %15 {offsets = [0, 96], sizes = [16, 32], strides = [1, 1]} : vector<16x384xbf16> to vector<16x32xbf16>
    %20 = tpu.concatenate %16, %17, %18, %19 in 0 : vector<16x32xbf16>, vector<16x32xbf16>, vector<16x32xbf16>, vector<16x32xbf16> -> vector<64x32xbf16>
    %21 = vector.shape_cast %20 : vector<64x32xbf16> to vector<8x8x32xbf16>
    %22 = vector.extract_strided_slice %15 {offsets = [0, 128], sizes = [16, 32], strides = [1, 1]} : vector<16x384xbf16> to vector<16x32xbf16>
    %23 = vector.extract_strided_slice %15 {offsets = [0, 160], sizes = [16, 32], strides = [1, 1]} : vector<16x384xbf16> to vector<16x32xbf16>
    %24 = vector.extract_strided_slice %15 {offsets = [0, 192], sizes = [16, 32], strides = [1, 1]} : vector<16x384xbf16> to vector<16x32xbf16>
    %25 = vector.extract_strided_slice %15 {offsets = [0, 224], sizes = [16, 32], strides = [1, 1]} : vector<16x384xbf16> to vector<16x32xbf16>
    %26 = tpu.concatenate %22, %23, %24, %25 in 0 : vector<16x32xbf16>, vector<16x32xbf16>, vector<16x32xbf16>, vector<16x32xbf16> -> vector<64x32xbf16>
    %27 = vector.shape_cast %26 : vector<64x32xbf16> to vector<8x8x32xbf16>
    %28 = vector.extract_strided_slice %15 {offsets = [0, 256], sizes = [16, 32], strides = [1, 1]} : vector<16x384xbf16> to vector<16x32xbf16>
    %29 = vector.extract_strided_slice %15 {offsets = [0, 288], sizes = [16, 32], strides = [1, 1]} : vector<16x384xbf16> to vector<16x32xbf16>
    %30 = vector.extract_strided_slice %15 {offsets = [0, 320], sizes = [16, 32], strides = [1, 1]} : vector<16x384xbf16> to vector<16x32xbf16>
    %31 = vector.extract_strided_slice %15 {offsets = [0, 352], sizes = [16, 32], strides = [1, 1]} : vector<16x384xbf16> to vector<16x32xbf16>
    %32 = tpu.concatenate %28, %29, %30, %31 in 0 : vector<16x32xbf16>, vector<16x32xbf16>, vector<16x32xbf16>, vector<16x32xbf16> -> vector<64x32xbf16>
    %33 = vector.shape_cast %32 : vector<64x32xbf16> to vector<8x8x32xbf16>
    "tpu.trace_start"() <{level = 10 : i32, message = "nqd,nkd->nqk"}> : () -> ()
    %cst_10 = arith.constant dense<0.000000e+00> : vector<8x8x8xf32>
    %34 = tpu.matmul %21, %27, %cst_10 {dimension_numbers = #tpu.dot_dimension_numbers<[2], [2], [1], [1], [0, 0, 0, 1, 1, 1], [0], [0]>} : vector<8x8x32xbf16>, vector<8x8x32xbf16>, vector<8x8x8xf32> -> vector<8x8x8xf32>
    "tpu.trace_stop"() : () -> ()
    %cst_11 = arith.constant 1.000000e+00 : f32
    %35 = vector.broadcast %cst_11 : f32 to vector<2x8x8xf32>
    %36 = arith.subf %1, %35 : vector<2x8x8xf32>
    %cst_12 = arith.constant 1.000000e+09 : f32
    %37 = vector.broadcast %cst_12 : f32 to vector<2x8x8xf32>
    %38 = arith.mulf %36, %37 : vector<2x8x8xf32>
    %39 = tpu.concatenate %38, %38, %38, %38 in 0 : vector<2x8x8xf32>, vector<2x8x8xf32>, vector<2x8x8xf32>, vector<2x8x8xf32> -> vector<8x8x8xf32>
    %40 = arith.addf %34, %39 : vector<8x8x8xf32>
    %cst_13 = arith.constant dense<0xFF800000> : vector<8x8xf32>
    %41 = vector.multi_reduction <maximumf>, %40, %cst_13 [2] : vector<8x8x8xf32> to vector<8x8xf32>
    %42 = vector.shape_cast %41 : vector<8x8xf32> to vector<8x8x1xf32>
    %43 = vector.broadcast %42 : vector<8x8x1xf32> to vector<8x8x8xf32>
    %44 = arith.subf %40, %43 : vector<8x8x8xf32>
    %45 = math.exp %44 : vector<8x8x8xf32>
    %cst_14 = arith.constant dense<0.000000e+00> : vector<8x8xf32>
    %46 = vector.multi_reduction <add>, %45, %cst_14 [2] : vector<8x8x8xf32> to vector<8x8xf32>
    %47 = vector.shape_cast %46 : vector<8x8xf32> to vector<8x8x1xf32>
    %48 = tpu.reciprocal %47 {approx = true} : vector<8x8x1xf32> -> vector<8x8x1xf32>
    %49 = vector.broadcast %48 : vector<8x8x1xf32> to vector<8x8x8xf32>
    %50 = arith.mulf %45, %49 : vector<8x8x8xf32>
    %51 = arith.truncf %50 : vector<8x8x8xf32> to vector<8x8x8xbf16>
    "tpu.trace_start"() <{level = 10 : i32, message = "nqk,nkd->nqd"}> : () -> ()
    %cst_15 = arith.constant dense<0.000000e+00> : vector<8x8x32xf32>
    %52 = tpu.matmul %51, %33, %cst_15 {dimension_numbers = #tpu.dot_dimension_numbers<[2], [1], [1], [2], [0, 0, 0, 1, 1, 2], [0], [0]>} : vector<8x8x8xbf16>, vector<8x8x32xbf16>, vector<8x8x32xf32> -> vector<8x8x32xf32>
    "tpu.trace_stop"() : () -> ()
    %53 = arith.truncf %52 : vector<8x8x32xf32> to vector<8x8x32xbf16>
    %c0_16 = arith.constant 0 : index
    %c0_17 = arith.constant 0 : index
    %54 = vector.load %arg5[%c0_16, %c0_17] : memref<128x128xbf16, #tpu.memory_space<vmem>>, vector<128x128xbf16>
    %55 = vector.extract_strided_slice %53 {offsets = [0, 0, 0], sizes = [1, 8, 32], strides = [1, 1, 1]} : vector<8x8x32xbf16> to vector<1x8x32xbf16>
    %56 = vector.shape_cast %55 : vector<1x8x32xbf16> to vector<8x32xbf16>
    %57 = vector.extract_strided_slice %53 {offsets = [1, 0, 0], sizes = [1, 8, 32], strides = [1, 1, 1]} : vector<8x8x32xbf16> to vector<1x8x32xbf16>
    %58 = vector.shape_cast %57 : vector<1x8x32xbf16> to vector<8x32xbf16>
    %59 = tpu.concatenate %56, %58 in 0 : vector<8x32xbf16>, vector<8x32xbf16> -> vector<16x32xbf16>
    %60 = vector.extract_strided_slice %54 {offsets = [0, 0], sizes = [32, 128], strides = [1, 1]} : vector<128x128xbf16> to vector<32x128xbf16>
    %cst_18 = arith.constant dense<0.000000e+00> : vector<16x128xf32>
    %61 = tpu.matmul %59, %60, %cst_18 {dimension_numbers = #tpu.dot_dimension_numbers<[1], [0], [0], [1], [0, 0, 1, 1], [], []>} : vector<16x32xbf16>, vector<32x128xbf16>, vector<16x128xf32> -> vector<16x128xf32>
    %62 = vector.extract_strided_slice %53 {offsets = [2, 0, 0], sizes = [1, 8, 32], strides = [1, 1, 1]} : vector<8x8x32xbf16> to vector<1x8x32xbf16>
    %63 = vector.shape_cast %62 : vector<1x8x32xbf16> to vector<8x32xbf16>
    %64 = vector.extract_strided_slice %53 {offsets = [3, 0, 0], sizes = [1, 8, 32], strides = [1, 1, 1]} : vector<8x8x32xbf16> to vector<1x8x32xbf16>
    %65 = vector.shape_cast %64 : vector<1x8x32xbf16> to vector<8x32xbf16>
    %66 = tpu.concatenate %63, %65 in 0 : vector<8x32xbf16>, vector<8x32xbf16> -> vector<16x32xbf16>
    %67 = vector.extract_strided_slice %54 {offsets = [32, 0], sizes = [32, 128], strides = [1, 1]} : vector<128x128xbf16> to vector<32x128xbf16>
    %cst_19 = arith.constant dense<0.000000e+00> : vector<16x128xf32>
    %68 = tpu.matmul %66, %67, %cst_19 {dimension_numbers = #tpu.dot_dimension_numbers<[1], [0], [0], [1], [0, 0, 1, 1], [], []>} : vector<16x32xbf16>, vector<32x128xbf16>, vector<16x128xf32> -> vector<16x128xf32>
    %69 = arith.addf %61, %68 : vector<16x128xf32>
    %70 = vector.extract_strided_slice %53 {offsets = [4, 0, 0], sizes = [1, 8, 32], strides = [1, 1, 1]} : vector<8x8x32xbf16> to vector<1x8x32xbf16>
    %71 = vector.shape_cast %70 : vector<1x8x32xbf16> to vector<8x32xbf16>
    %72 = vector.extract_strided_slice %53 {offsets = [5, 0, 0], sizes = [1, 8, 32], strides = [1, 1, 1]} : vector<8x8x32xbf16> to vector<1x8x32xbf16>
    %73 = vector.shape_cast %72 : vector<1x8x32xbf16> to vector<8x32xbf16>
    %74 = tpu.concatenate %71, %73 in 0 : vector<8x32xbf16>, vector<8x32xbf16> -> vector<16x32xbf16>
    %75 = vector.extract_strided_slice %54 {offsets = [64, 0], sizes = [32, 128], strides = [1, 1]} : vector<128x128xbf16> to vector<32x128xbf16>
    %cst_20 = arith.constant dense<0.000000e+00> : vector<16x128xf32>
    %76 = tpu.matmul %74, %75, %cst_20 {dimension_numbers = #tpu.dot_dimension_numbers<[1], [0], [0], [1], [0, 0, 1, 1], [], []>} : vector<16x32xbf16>, vector<32x128xbf16>, vector<16x128xf32> -> vector<16x128xf32>
    %77 = arith.addf %69, %76 : vector<16x128xf32>
    %78 = vector.extract_strided_slice %53 {offsets = [6, 0, 0], sizes = [1, 8, 32], strides = [1, 1, 1]} : vector<8x8x32xbf16> to vector<1x8x32xbf16>
    %79 = vector.shape_cast %78 : vector<1x8x32xbf16> to vector<8x32xbf16>
    %80 = vector.extract_strided_slice %53 {offsets = [7, 0, 0], sizes = [1, 8, 32], strides = [1, 1, 1]} : vector<8x8x32xbf16> to vector<1x8x32xbf16>
    %81 = vector.shape_cast %80 : vector<1x8x32xbf16> to vector<8x32xbf16>
    %82 = tpu.concatenate %79, %81 in 0 : vector<8x32xbf16>, vector<8x32xbf16> -> vector<16x32xbf16>
    %83 = vector.extract_strided_slice %54 {offsets = [96, 0], sizes = [32, 128], strides = [1, 1]} : vector<128x128xbf16> to vector<32x128xbf16>
    %cst_21 = arith.constant dense<0.000000e+00> : vector<16x128xf32>
    %84 = tpu.matmul %82, %83, %cst_21 {dimension_numbers = #tpu.dot_dimension_numbers<[1], [0], [0], [1], [0, 0, 1, 1], [], []>} : vector<16x32xbf16>, vector<32x128xbf16>, vector<16x128xf32> -> vector<16x128xf32>
    %85 = arith.addf %77, %84 : vector<16x128xf32>
    %86 = vector.broadcast %3 : vector<1x128xf32> to vector<16x128xf32>
    %87 = arith.addf %85, %86 : vector<16x128xf32>
    %88 = arith.addf %0, %87 : vector<16x128xf32>
    %cst_22 = arith.constant dense<0.000000e+00> : vector<16xf32>
    %89 = vector.multi_reduction <add>, %88, %cst_22 [1] : vector<16x128xf32> to vector<16xf32>
    %90 = vector.shape_cast %89 : vector<16xf32> to vector<16x1xf32>
    %cst_23 = arith.constant 1.280000e+02 : f32
    %91 = vector.broadcast %cst_23 : f32 to vector<16x1xf32>
    %92 = arith.divf %90, %91 : vector<16x1xf32>
    %93 = vector.broadcast %92 : vector<16x1xf32> to vector<16x128xf32>
    %94 = arith.subf %88, %93 : vector<16x128xf32>
    %95 = arith.mulf %94, %94 : vector<16x128xf32>
    %cst_24 = arith.constant dense<0.000000e+00> : vector<16xf32>
    %96 = vector.multi_reduction <add>, %95, %cst_24 [1] : vector<16x128xf32> to vector<16xf32>
    %97 = vector.shape_cast %96 : vector<16xf32> to vector<16x1xf32>
    %cst_25 = arith.constant 1.280000e+02 : f32
    %98 = vector.broadcast %cst_25 : f32 to vector<16x1xf32>
    %99 = arith.divf %97, %98 : vector<16x1xf32>
    %100 = vector.broadcast %92 : vector<16x1xf32> to vector<16x128xf32>
    %101 = arith.subf %88, %100 : vector<16x128xf32>
    %cst_26 = arith.constant 9.99999974E-6 : f32
    %102 = vector.broadcast %cst_26 : f32 to vector<16x1xf32>
    %103 = arith.addf %99, %102 : vector<16x1xf32>
    %104 = math.rsqrt %103 : vector<16x1xf32>
    %105 = vector.broadcast %104 : vector<16x1xf32> to vector<16x128xf32>
    %106 = arith.mulf %101, %105 : vector<16x128xf32>
    %107 = vector.broadcast %5 : vector<1x128xf32> to vector<16x128xf32>
    %108 = arith.mulf %106, %107 : vector<16x128xf32>
    %109 = vector.broadcast %6 : vector<1x128xf32> to vector<16x128xf32>
    %110 = arith.addf %108, %109 : vector<16x128xf32>
    %111 = arith.truncf %110 : vector<16x128xf32> to vector<16x128xbf16>
    %c0_27 = arith.constant 0 : index
    %c0_28 = arith.constant 0 : index
    %112 = vector.load %arg6[%c0_27, %c0_28] : memref<128x256xbf16, #tpu.memory_space<vmem>>, vector<128x256xbf16>
    %cst_29 = arith.constant dense<0.000000e+00> : vector<16x256xf32>
    %113 = tpu.matmul %111, %112, %cst_29 {dimension_numbers = #tpu.dot_dimension_numbers<[1], [0], [0], [1], [0, 0, 1, 1], [], []>} : vector<16x128xbf16>, vector<128x256xbf16>, vector<16x256xf32> -> vector<16x256xf32>
    %c0_30 = arith.constant 0 : index
    %c0_31 = arith.constant 0 : index
    %114 = vector.load %arg7[%c0_30, %c0_31] : memref<1x256xf32, #tpu.memory_space<vmem>>, vector<1x256xf32>
    %115 = vector.broadcast %114 : vector<1x256xf32> to vector<16x256xf32>
    %116 = arith.addf %113, %115 : vector<16x256xf32>
    %cst_32 = arith.constant 0.000000e+00 : f32
    %117 = vector.broadcast %cst_32 : f32 to vector<16x256xf32>
    %118 = arith.maximumf %116, %117 : vector<16x256xf32>
    %119 = arith.truncf %118 : vector<16x256xf32> to vector<16x256xbf16>
    %c0_33 = arith.constant 0 : index
    %c0_34 = arith.constant 0 : index
    %120 = vector.load %arg8[%c0_33, %c0_34] : memref<256x128xbf16, #tpu.memory_space<vmem>>, vector<256x128xbf16>
    %cst_35 = arith.constant dense<0.000000e+00> : vector<16x128xf32>
    %121 = tpu.matmul %119, %120, %cst_35 {dimension_numbers = #tpu.dot_dimension_numbers<[1], [0], [0], [1], [0, 0, 1, 1], [], []>} : vector<16x256xbf16>, vector<256x128xbf16>, vector<16x128xf32> -> vector<16x128xf32>
    %122 = vector.broadcast %4 : vector<1x128xf32> to vector<16x128xf32>
    %123 = arith.addf %121, %122 : vector<16x128xf32>
    %124 = arith.addf %110, %123 : vector<16x128xf32>
    %cst_36 = arith.constant dense<0.000000e+00> : vector<16xf32>
    %125 = vector.multi_reduction <add>, %124, %cst_36 [1] : vector<16x128xf32> to vector<16xf32>
    %126 = vector.shape_cast %125 : vector<16xf32> to vector<16x1xf32>
    %cst_37 = arith.constant 1.280000e+02 : f32
    %127 = vector.broadcast %cst_37 : f32 to vector<16x1xf32>
    %128 = arith.divf %126, %127 : vector<16x1xf32>
    %129 = vector.broadcast %128 : vector<16x1xf32> to vector<16x128xf32>
    %130 = arith.subf %124, %129 : vector<16x128xf32>
    %131 = arith.mulf %130, %130 : vector<16x128xf32>
    %cst_38 = arith.constant dense<0.000000e+00> : vector<16xf32>
    %132 = vector.multi_reduction <add>, %131, %cst_38 [1] : vector<16x128xf32> to vector<16xf32>
    %133 = vector.shape_cast %132 : vector<16xf32> to vector<16x1xf32>
    %cst_39 = arith.constant 1.280000e+02 : f32
    %134 = vector.broadcast %cst_39 : f32 to vector<16x1xf32>
    %135 = arith.divf %133, %134 : vector<16x1xf32>
    %136 = vector.broadcast %128 : vector<16x1xf32> to vector<16x128xf32>
    %137 = arith.subf %124, %136 : vector<16x128xf32>
    %cst_40 = arith.constant 9.99999974E-6 : f32
    %138 = vector.broadcast %cst_40 : f32 to vector<16x1xf32>
    %139 = arith.addf %135, %138 : vector<16x1xf32>
    %140 = math.rsqrt %139 : vector<16x1xf32>
    %141 = vector.broadcast %140 : vector<16x1xf32> to vector<16x128xf32>
    %142 = arith.mulf %137, %141 : vector<16x128xf32>
    %143 = vector.broadcast %7 : vector<1x128xf32> to vector<16x128xf32>
    %144 = arith.mulf %142, %143 : vector<16x128xf32>
    %145 = vector.broadcast %8 : vector<1x128xf32> to vector<16x128xf32>
    %146 = arith.addf %144, %145 : vector<16x128xf32>
    %c0_41 = arith.constant 0 : index
    %c0_42 = arith.constant 0 : index
    %147 = vector.load %arg10[%c0_41, %c0_42] : memref<16x128xf32, #tpu.memory_space<vmem>>, vector<16x128xf32>
    tpu.vector_store %arg10[%c0_41, %c0_42], %146 {strides = array<i32>} : memref<16x128xf32, #tpu.memory_space<vmem>>, vector<16x128xf32>,
    return
  }
  func.func @transform_0(%arg0: i32) -> (i32, i32) {
    %c0_i32 = arith.constant 0 : i32
    %c0_i32_0 = arith.constant 0 : i32
    return %arg0, %c0_i32 : i32, i32
  }
  func.func @transform_1(%arg0: i32) -> (i32, i32, i32) {
    %c0_i32 = arith.constant 0 : i32
    %c0_i32_0 = arith.constant 0 : i32
    %c0_i32_1 = arith.constant 0 : i32
    return %arg0, %c0_i32, %c0_i32_0 : i32, i32, i32
  }
  func.func @transform_2(%arg0: i32) -> (i32, i32) {
    %c0_i32 = arith.constant 0 : i32
    %c0_i32_0 = arith.constant 0 : i32
    %c0_i32_1 = arith.constant 0 : i32
    return %c0_i32, %c0_i32_0 : i32, i32
  }
  func.func @transform_3(%arg0: i32) -> (i32, i32) {
    %c0_i32 = arith.constant 0 : i32
    %c0_i32_0 = arith.constant 0 : i32
    %c0_i32_1 = arith.constant 0 : i32
    return %c0_i32, %c0_i32_0 : i32, i32
  }
  func.func @transform_4(%arg0: i32) -> (i32, i32) {
    %c0_i32 = arith.constant 0 : i32
    %c0_i32_0 = arith.constant 0 : i32
    %c0_i32_1 = arith.constant 0 : i32
    return %c0_i32, %c0_i32_0 : i32, i32
  }
  func.func @transform_5(%arg0: i32) -> (i32, i32) {
    %c0_i32 = arith.constant 0 : i32
    %c0_i32_0 = arith.constant 0 : i32
    %c0_i32_1 = arith.constant 0 : i32
    return %c0_i32, %c0_i32_0 : i32, i32
  }
  func.func @transform_6(%arg0: i32) -> (i32, i32) {
    %c0_i32 = arith.constant 0 : i32
    %c0_i32_0 = arith.constant 0 : i32
    %c0_i32_1 = arith.constant 0 : i32
    return %c0_i32, %c0_i32_0 : i32, i32
  }
  func.func @transform_7(%arg0: i32) -> (i32, i32) {
    %c0_i32 = arith.constant 0 : i32
    %c0_i32_0 = arith.constant 0 : i32
    %c0_i32_1 = arith.constant 0 : i32
    return %c0_i32, %c0_i32_0 : i32, i32
  }
  func.func @transform_8(%arg0: i32) -> (i32, i32) {
    %c0_i32 = arith.constant 0 : i32
    %c0_i32_0 = arith.constant 0 : i32
    %c0_i32_1 = arith.constant 0 : i32
    return %c0_i32, %c0_i32_0 : i32, i32
  }
  func.func @transform_9(%arg0: i32) -> (i32, i32) {
    %c0_i32 = arith.constant 0 : i32
    %c0_i32_0 = arith.constant 0 : i32
    return %arg0, %c0_i32 : i32, i32
  }
}

</mosaic_0001>

<bundles_post_ra>
// kernel: encoder_layer.1
= control target key start
LH: loop header
LB: loop body
LE: loop exit
PB: predicated region body
PF: predicated region fallthrough
CT: control target
= control target key end

     0   :  { %14 = vsyncpa [#allocation3], 0  ;;  %s2951_s0 = inlined_call_operand.hbm [shape: f32[16,128], index: 0, kind: input, shape index: {}]   ;;  %s2952_s1 = inlined_call_operand.hbm [shape: f32[2,8,8], index: 1, kind: input, shape index: {}]   ;;  %s2953_s2 = inlined_call_operand.hbm [shape: bf16[128,384], index: 2, kind: input, shape index: {}]   ;;  %s2954_s3 = inlined_call_operand.vmem [shape: f32[1,384], index: 3, kind: input, shape index: {}]   ;;  %s2955_s4 = inlined_call_operand.hbm [shape: bf16[128,128], index: 4, kind: input, shape index: {}]   ;;  %s2956_s5 = inlined_call_operand.hbm [shape: bf16[128,256], index: 5, kind: input, shape index: {}]   ;;  %s2957_s6 = inlined_call_operand.vmem [shape: f32[1,256], index: 6, kind: input, shape index: {}]   ;;  %s2958_s7 = inlined_call_operand.hbm [shape: bf16[256,128], index: 7, kind: input, shape index: {}]   ;;  %s2959_s8 = inlined_call_operand.vmem [shape: f32[8,128], index: 8, kind: input, shape index: {}]   ;;  %s2960_s9 = inlined_call_operand.hbm [shape: f32[16,128], index: 9, kind: output, shape index: {}]  }
   0x1   :  { %15 = vsyncpa [#allocation6], 0 }
   0x2   :  { %16 = vsyncpa [#allocation9], 0 }
   0x3   :  { %17 = vsyncpa [#allocation12], 0 }
   0x4   :  { %18 = vsyncpa [#allocation4], 0  ;;  %s2621_s30 = smov [#allocation5]   ;;  %s2622_s11 = smov [#allocation8]  }
   0x5   :  { %s36_s10 = sshll.u32 %s2621_s30, 4  ;;  %s62_s12 = sshll.u32 %s2622_s11, 4  ;;  %s37_s10 = int_to_ptr.vmem [resolvable:$true] %s36_s10  ;;  %s63_s12 = int_to_ptr.vmem [resolvable:$true] %s62_s12 }
   0x6   :  { %s2479_s13 = scalar_lea.vmem %s37_s10, 256  ;;  %p2484_p1 = scmp.lt.s32.totalorder %s37_s10, %s37_s10 }
   0x7   :  { %p2480_p0 = scmp.ne.s32.totalorder %s37_s10, %s2479_s13  ;;  %p2485_p2 = scmp.lt.s32.totalorder %s2479_s13, %s2479_s13 }
   0x9   :  { %p2486_p3 = por %p2485_p2, %p2484_p1 }
   0xb   :  { %p2487_p4 = pnand %p2486_p3, %p2480_p0 }
   0xd   :  { %2490 = shalt.err (!%p2487_p4)
}
   0xe   :  { %s2623_s14 = smov 128   ;;  %s2624_s15 = smov 8  }
   0xf   :  { %42 = dma.hbm_to_vmem [thread:$0]  %s2952_s1, 256, %s37_s10, [#allocation6], %s2623_s14, %s2623_s14, %s2624_s15  }
  0x10   :  { %s2499_s18 = scalar_lea.vmem %s63_s12, 1024  ;;  %p2504_p6 = scmp.lt.s32.totalorder %s63_s12, %s63_s12 }
  0x11   :  { %p2500_p5 = scmp.ne.s32.totalorder %s63_s12, %s2499_s18  ;;  %p2505_p7 = scmp.lt.s32.totalorder %s2499_s18, %s2499_s18 }
  0x13   :  { %p2506_p8 = por %p2505_p7, %p2504_p6 }
  0x15   :  { %p2507_p9 = pnand %p2506_p8, %p2500_p5 }
  0x17   :  { %2510 = shalt.err (!%p2507_p9)
}
  0x18   :  { %s2625_s19 = smov 64   ;;  %s2626_s20 = smov 4  }
  0x19   :  { %68 = dma.hbm_to_vmem [thread:$0]  %s2955_s4, 1024, %s63_s12, [#allocation9], %s2625_s19, %s2625_s19, %s2626_s20  }
  0x1a   :  { %s2627_s23 = smov [#allocation2]   ;;  %s2628_s25 = smov [#allocation7]  }
  0x1b   :  { %s24_s24 = sshll.u32 %s2627_s23, 4  ;;  %s48_s1 = sshll.u32 %s2628_s25, 4  ;;  %s25_s24 = int_to_ptr.vmem [resolvable:$true] %s24_s24  ;;  %s49_s1 = int_to_ptr.vmem [resolvable:$true] %s48_s1 }
  0x1c   :  { %s2519_s26 = scalar_lea.vmem %s25_s24, 256  ;;  %p2524_p11 = scmp.lt.s32.totalorder %s25_s24, %s25_s24 }
  0x1d   :  { %p2520_p10 = scmp.ne.s32.totalorder %s25_s24, %s2519_s26  ;;  %p2525_p12 = scmp.lt.s32.totalorder %s2519_s26, %s2519_s26 }
  0x1f   :  { %p2526_p13 = por %p2525_p12, %p2524_p11 }
  0x21   :  { %p2527_p0 = pnand %p2526_p13, %p2520_p10 }
  0x23   :  { %2530 = shalt.err (!%p2527_p0)
}
  0x24   :  { %30 = dma.hbm_to_vmem [thread:$0]  %s2951_s0, 256, %s25_s24, [#allocation3], %s2623_s14, %s2623_s14, %s2624_s15  }
  0x25   :  { %s2539_s4 = scalar_lea.vmem %s49_s1, 3072  ;;  %p2544_p2 = scmp.lt.s32.totalorder %s49_s1, %s49_s1 }
  0x26   :  { %p2540_p1 = scmp.ne.s32.totalorder %s49_s1, %s2539_s4  ;;  %p2545_p3 = scmp.lt.s32.totalorder %s2539_s4, %s2539_s4 }
  0x28   :  { %p2546_p4 = por %p2545_p3, %p2544_p2 }
  0x2a   :  { %p2547_p5 = pnand %p2546_p4, %p2540_p1 }
  0x2c   :  { %2550 = shalt.err (!%p2547_p5)
}
  0x2d   :  { %s2629_s29 = smov 192   ;;  %s2630_s30 = smov 12  }
  0x2e   :  { %54 = dma.hbm_to_vmem [thread:$0]  %s2953_s2, 3072, %s49_s1, [#allocation6], %s2629_s29, %s2629_s29, %s2630_s30  }
  0x2f   :  { %s2631_s12 = smov [#allocation10]   ;;  %s2632_s16 = smov [#allocation11]  }
  0x30   :  { %s74_s13 = sshll.u32 %s2631_s12, 4  ;;  %s88_s17 = sshll.u32 %s2632_s16, 4  ;;  %s75_s13 = int_to_ptr.vmem [resolvable:$true] %s74_s13  ;;  %s89_s17 = int_to_ptr.vmem [resolvable:$true] %s88_s17 }
  0x31   :  { %s2559_s0 = scalar_lea.vmem %s75_s13, 2048  ;;  %p2564_p7 = scmp.lt.s32.totalorder %s75_s13, %s75_s13 }
  0x32   :  { %p2560_p6 = scmp.ne.s32.totalorder %s75_s13, %s2559_s0  ;;  %p2565_p8 = scmp.lt.s32.totalorder %s2559_s0, %s2559_s0 }
  0x34   :  { %p2566_p9 = por %p2565_p8, %p2564_p7 }
  0x36   :  { %p2567_p10 = pnand %p2566_p9, %p2560_p6 }
  0x38   :  { %2570 = shalt.err (!%p2567_p10)
}
  0x39   :  { %80 = dma.hbm_to_vmem [thread:$0]  %s2956_s5, 2048, %s75_s13, [#allocation9], %s2623_s14, %s2623_s14, %s2624_s15  }
  0x3a   :  { %s2579_s2 = scalar_lea.vmem %s89_s17, 2048  ;;  %p2584_p12 = scmp.lt.s32.totalorder %s89_s17, %s89_s17 }
  0x3b   :  { %p2580_p11 = scmp.ne.s32.totalorder %s89_s17, %s2579_s2  ;;  %p2585_p13 = scmp.lt.s32.totalorder %s2579_s2, %s2579_s2 }
  0x3d   :  { %p2586_p0 = por %p2585_p13, %p2584_p12 }
  0x3f   :  { %p2587_p1 = pnand %p2586_p0, %p2580_p11 }
  0x41   :  { %2590 = shalt.err (!%p2587_p1)
}
  0x42   :  { %94 = dma.hbm_to_vmem [thread:$0]  %s2958_s7, 2048, %s89_s17, [#allocation12], %s2625_s19, %s2625_s19, %s2626_s20  }
  0x43   :  { %2611 = dma.done.wait [#allocation3], 256  }
  0x44   :  { %2612 = vsyncadd [#allocation3], 4294967040 }
  0x45   :  { %2613 = dma.done.wait [#allocation6], 3328  }
  0x46   :  { %2614 = vsyncadd [#allocation6], 4294963968 }
  0x47   :  { %2615 = dma.done.wait [#allocation9], 3072  }
  0x48   :  { %2616 = vsyncadd [#allocation9], 4294964224 }
  0x49   :  { %2617 = dma.done.wait [#allocation12], 2048  }
  0x4a   :  { %2618 = vsyncadd [#allocation12], 4294965248  ;;  %v2633_v0 = vmov 0   ;;  %v2634_v1 = vmov 0.0   ;;  %v2351_v2 = vld [vmem:[#allocation7 + $0xac] ss:$12 sps:$4 sm:$0xff]   ;;  %v156_v29 = vlaneseq }
  0x4b   :  { %331 = vmatprep.mubr.bf16.mxu0 %v2633_v0  ;;  %2185 = vmatprep.subr.bf16.mxu1 %v2634_v1  ;;  %v2353_v3 = vld [vmem:[#allocation7 + $0xa8] ss:$12 sps:$4 sm:$0xff]   ;;  %v2356_v5 = vld [vmem:[#allocation7 + $0x90] ss:$12 sps:$4 sm:$0xff]   ;;  %v2359_v7 = vld [vmem:[#allocation7 + $0x78] ss:$12 sps:$4 sm:$0xff]  }
  0x4c   :  { %299 = vmatprep.subr.bf16.mxu0 %v2351_v2  ;;  %v2354_v4 = vld [vmem:[#allocation7 + $0x94] ss:$12 sps:$4 sm:$0xff]   ;;  %v2357_v6 = vld [vmem:[#allocation7 + $0x7c] ss:$12 sps:$4 sm:$0xff]   ;;  %v2360_v8 = vld [vmem:[#allocation7 + $0x64] ss:$12 sps:$4 sm:$0xff]  }
  0x4d   :  { %300 = vmatpush1.bf16.msra.mxu0 %v2353_v3  ;;  %v2362_v9 = vld [vmem:[#allocation7 + $0x60] ss:$12 sps:$4 sm:$0xff]   ;;  %v2375_v11 = vld [vmem:[#allocation7 + $0xb0] ss:$12 sps:$4 sm:$0xff]   ;;  %v2376_v12 = vld [vmem:[#allocation7 + $0x98] ss:$12 sps:$4 sm:$0xff]  }
  0x4e   :  { %301 = vmatprep.subr.bf16.mxu0 %v2354_v4  ;;  %v2363_v10 = vld [vmem:[#allocation7 + $0x4c] ss:$12 sps:$4 sm:$0xff]   ;;  %2186 = vmatpush3.bf16.msra.mxu1 %v2375_v11  ;;  %v2365_v13 = vld [vmem:[#allocation7 + $0x48] ss:$12 sps:$4 sm:$0xff]   ;;  %v2368_v16 = vld [vmem:[#allocation7 + $0x30] ss:$12 sps:$4 sm:$0xff]  }
  0x4f   :  { %2187 = vmatprep.subr.bf16.mxu1 %v2634_v1  ;;  %v2366_v14 = vld [vmem:[#allocation7 + $0x34] ss:$12 sps:$4 sm:$0xff]   ;;  %v2369_v17 = vld [vmem:[#allocation7 + $0x1c] ss:$12 sps:$4 sm:$0xff]   ;;  %v2371_v19 = vld [vmem:[#allocation7 + $0x18] ss:$12 sps:$4 sm:$0xff]  }
  0x50   :  { %v2377_v15 = vld [vmem:[#allocation7 + $0x80] ss:$12 sps:$4 sm:$0xff]   ;;  %v2378_v18 = vld [vmem:[#allocation7 + $0x68] ss:$12 sps:$4 sm:$0xff]   ;;  %v2372_v20 = vld [vmem:[#allocation7 + $0x4] ss:$12 sps:$4 sm:$0xff]  }
  0x51   :  { %302 = vmatpush1.bf16.msra.mxu0 %v2356_v5  ;;  %v2379_v21 = vld [vmem:[#allocation7 + $0x50] ss:$12 sps:$4 sm:$0xff]   ;;  %v2374_v22 = vld [vmem:[#allocation7] ss:$12 sps:$4 sm:$0xff]   ;;  %v2380_v26 = vld [vmem:[#allocation7 + $0x38] ss:$12 sps:$4 sm:$0xff]  }
  0x52   :  { %303 = vmatprep.subr.bf16.mxu0 %v2357_v6  ;;  %2188 = vmatpush3.bf16.msra.mxu1 %v2376_v12  ;;  %v2727_v23 = vld [vmem:[#allocation2] sm:$0xff]  ;;  %v2729_v24 = vld [vmem:[#allocation2 + $0x8] sm:$0xff]  ;;  %vm2635_vm0 = vmmov 0   ;;  %v2745_v30 = vshrl.u32 %v156_v29, 7  ;;  %vm459_vm1 = vcmask 261120   ;;  %s2637_s20 = smov 32  }
  0x53   :  { %2189 = vmatprep.subr.bf16.mxu1 %v2634_v1  ;;  %v121_v25 = vpack.c.bf16 %v2729_v24, %v2727_v23  ;;  %v2381_v27 = vld [vmem:[#allocation7 + $0x20] ss:$12 sps:$4 sm:$0xff]   ;;  %v2382_v28 = vld [vmem:[#allocation7 + $0x8] ss:$12 sps:$4 sm:$0xff]   ;;  %2201 = vmatprep.mubr.msk.bf16.mxu1 %vm2635_vm0, %v2634_v1  ;;  %vm928_vm2 = vcmask 1043456   ;;  %vm828_vm3 = vcmask 64512  }
  0x54   :  { %v2748_v31 = vsub.s32 1, %v2745_v30  ;;  %v154_v32 = vld [vmem:[%s2954_s3] sm:$0x7]  ;;  %v2755_v35 = vsub.s32 0, %v2745_v30  ;;  %s2636_s3 = smov 96   ;;  %v166_v52 = vsub.s32 2, %v2745_v30 }
  0x55   :  { %304 = vmatpush1.bf16.msra.mxu0 %v2359_v7  ;;  %v118_v29 = vld [vmem:[#allocation5] sm:$0xff] }
  0x56   :  { %305 = vmatprep.subr.bf16.mxu0 %v2360_v8  ;;  %2190 = vmatpush3.bf16.msra.mxu1 %v2377_v15  ;;  %v163_v33 = vrot.slane %v154_v32, %v2748_v31  ;;  %v159_v39 = vrot.slane %v154_v32, %v2755_v35  ;;  %v167_v53 = vrot.slane %v154_v32, %v166_v52  ;;  %v2042_v32 = vadd.f32 -1.0, %v118_v29 }
  0x57   :  { %2191 = vmatprep.subr.bf16.mxu1 %v2634_v1 }
  0x59   :  { %306 = vmatpush1.bf16.msra.mxu0 %v2362_v9 }
  0x5a   :  { %307 = vmatprep.subr.bf16.mxu0 %v2363_v10  ;;  %2192 = vmatpush3.bf16.msra.mxu1 %v2378_v18 }
  0x5b   :  { %2193 = vmatprep.subr.bf16.mxu1 %v2634_v1 }
  0x5d   :  { %308 = vmatpush1.bf16.msra.mxu0 %v2365_v13 }
  0x5e   :  { %309 = vmatprep.subr.bf16.mxu0 %v2366_v14  ;;  %2194 = vmatpush3.bf16.msra.mxu1 %v2379_v21 }
  0x5f   :  { %2195 = vmatprep.subr.bf16.mxu1 %v2634_v1 }
  0x61   :  { %310 = vmatpush1.bf16.msra.mxu0 %v2368_v16 }
  0x62   :  { %311 = vmatprep.subr.bf16.mxu0 %v2369_v17  ;;  %2196 = vmatpush3.bf16.msra.mxu1 %v2380_v26 }
  0x63   :  { %2197 = vmatprep.subr.bf16.mxu1 %v2634_v1 }
  0x65   :  { %312 = vmatpush1.bf16.msra.mxu0 %v2371_v19 }
  0x66   :  { %313 = vmatprep.subr.bf16.mxu0 %v2372_v20  ;;  %2198 = vmatpush3.bf16.msra.mxu1 %v2381_v27 }
  0x67   :  { %2199 = vmatprep.subr.bf16.mxu1 %v2634_v1 }
  0x69   :  { %314 = vmatpush1.bf16.msra.mxu0 %v2374_v22 }
  0x6a   :  { %2205 = vmatprep.subr.bf16.mxu0 %v2634_v1  ;;  %2200 = vmatpush3.bf16.msra.mxu1 %v2382_v28 }
  0x6b   :  { %2211 = vmatprep.subr.bf16.mxu1 %v2634_v1 }
  0x6c   :  { %332 = vmatmul.mubr.bf16.vlgmr.msra.gmra.mxu0 %v121_v25 }
  0x6d   :  { %2207 = vmatprep.mubr.msk.bf16.mxu0 %vm2635_vm0, %v2634_v1  ;;  %2202 = vmatmul.mubr.bf16.vlgmr.msra.gmra.mxu1 %v121_v25 }
  0x6e   :  { %2213 = vmatprep.mubr.msk.bf16.mxu1 %vm2635_vm0, %v2634_v1 }
 0x12c   :  { %v333_v34 = vpop.f32.mrf.mxu0 }
 0x12d   :  { %v334_v44 = vadd.f32 %v333_v34, %v159_v39  ;;  %v376_v54 = vpop.f32.mrf.mxu1  ;;  %v457_v34 = vmul.f32 1e+09, %v2042_v32 }
 0x12e   :  { %v335_v36 = vpop.f32.mrf.mxu0  ;;  %v377_v56 = vadd.f32 %v376_v54, %v167_v53 }
 0x12f   :  { %v336_v37 = vadd.f32 %v335_v36, %v163_v33  ;;  %v2104_v49 = vpack.c.bf16 %v334_v44, %v334_v44  ;;  %v2203_v55 = vpop.f32.mrf.mxu1 }
 0x130   :  { %v337_v38 = vpop.f32.mrf.mxu0  ;;  %v2108_v20 = vpack.c.bf16 %v377_v56, %v377_v56 }
 0x131   :  { %v2106_v40 = vpack.c.bf16 %v336_v37, %v336_v37  ;;  %v338_v45 = vadd.f32 %v337_v38, %v159_v39  ;;  %v379_v57 = vpop.f32.mrf.mxu1 }
 0x132   :  { %v339_v41 = vpop.f32.mrf.mxu0  ;;  %v380_v58 = vadd.f32 %v379_v57, %v167_v53  ;;  %v930_v27 = vsel %vm928_vm2, %v2108_v20, 0 }
 0x133   :  { %v340_v42 = vadd.f32 %v339_v41, %v163_v33  ;;  %v464_v43 = vsel %vm459_vm1, %v2106_v40, 0  ;;  %v383_v50 = vpack.c.bf16 %v338_v45, %v334_v44  ;;  %v2105_v51 = vpack.c.bf16 %v338_v45, %v338_v45  ;;  %v2204_v59 = vpop.f32.mrf.mxu1  ;;  %v119_v33 = vld [vmem:[#allocation5 + $0x8] sm:$0xff] }
 0x134   :  { %2206 = vmatpush3.bf16.xpose.msra.mxu0 %v464_v43  ;;  %v2777_v60 = vpack.c.bf16 %v380_v58, %v377_v56  ;;  %v2109_v21 = vpack.c.bf16 %v380_v58, %v380_v58  ;;  %v2043_v36 = vadd.f32 -1.0, %v119_v33 }
 0x135   :  { %v384_v46 = vpack.c.bf16 %v340_v42, %v336_v37  ;;  %v2107_v47 = vpack.c.bf16 %v340_v42, %v340_v42  ;;  %2217 = vmatprep.subr.bf16.mxu0 %v2634_v1 }
 0x136   :  { %v976_v28 = vsel %vm928_vm2, %v2109_v21, 0  ;;  %v458_v39 = vmul.f32 1e+09, %v2043_v36 }
 0x137   :  { %412 = vrot.lane.b32.xlu1 %v384_v46, %s2625_s19  ;;  %410 = vrot.lane.b32.xlu0 %v384_v46, %s2636_s3  ;;  %v510_v48 = vsel %vm459_vm1, %v2107_v47, 0 }
 0x138   :  { %2212 = vmatpush3.bf16.xpose.msra.mxu1 %v510_v48 }
 0x139   :  { %2223 = vmatprep.subr.bf16.mxu1 %v2634_v1 }
 0x13b   :  { %2208 = vmatmul.mubr.msk.bf16.vlgmr.msra.gmra.mxu0 %vm459_vm1, %v2104_v49  ;;  %389 = vrot.lane.b32.xlu1 %v383_v50, %s2625_s19 }
 0x13c   :  { %387 = vrot.lane.b32.xlu0 %v383_v50, %s2636_s3  ;;  %2219 = vmatprep.mubr.msk.bf16.mxu0 %vm2635_vm0, %v2634_v1 }
 0x13f   :  { %2214 = vmatmul.mubr.msk.bf16.vlgmr.msra.gmra.mxu1 %vm459_vm1, %v2105_v51  ;;  %391 = vrot.lane.b32.xlu1 %v383_v50, %s2637_s20 }
 0x140   :  { %414 = vrot.lane.b32.xlu0 %v384_v46, %s2637_s20  ;;  %2225 = vmatprep.mubr.msk.bf16.mxu1 %vm2635_vm0, %v2634_v1 }
 0x1a9   :  { %v411_v61 = vpop.permute.xlu0 %410  ;;  %v413_v4 = vpop.permute.xlu1 %412 }
 0x1aa   :  { %v2028_v62 = vcombine.low %v411_v61, %v411_v61  ;;  %v2029_v63 = vcombine.high %v411_v61, %v411_v61  ;;  %v2030_v6 = vcombine.low %v413_v4, %v413_v4  ;;  %v2031_v7 = vcombine.high %v413_v4, %v413_v4 }
 0x1ac   :  { %v556_v2 = vsel %vm459_vm1, %v2028_v62, 0  ;;  %v602_v3 = vsel %vm459_vm1, %v2029_v63, 0  ;;  %v648_v10 = vsel %vm459_vm1, %v2030_v6, 0  ;;  %v694_v11 = vsel %vm459_vm1, %v2031_v7, 0 }
 0x1ad   :  { %2218 = vmatpush3.bf16.xpose.msra.mxu0 %v556_v2  ;;  %2224 = vmatpush3.bf16.xpose.msra.mxu1 %v602_v3  ;;  %v390_v13 = vpop.permute.xlu1 %389 }
 0x1ae   :  { %2229 = vmatprep.subr.bf16.mxu0 %v2634_v1  ;;  %2235 = vmatprep.subr.bf16.mxu1 %v2634_v1  ;;  %v388_v5 = vpop.permute.xlu0 %387  ;;  %v2022_v16 = vcombine.low %v390_v13, %v390_v13  ;;  %v2023_v17 = vcombine.high %v390_v13, %v390_v13 }
 0x1af   :  { %v2020_v8 = vcombine.low %v388_v5, %v388_v5  ;;  %v2021_v9 = vcombine.high %v388_v5, %v388_v5 }
 0x1b1   :  { %v392_v22 = vpop.permute.xlu1 %391 }
 0x1b2   :  { %v415_v12 = vpop.permute.xlu0 %414  ;;  %v2024_v25 = vcombine.low %v392_v22, %v392_v22  ;;  %v2025_v26 = vcombine.high %v392_v22, %v392_v22 }
 0x1b3   :  { %v2032_v14 = vcombine.low %v415_v12, %v415_v12  ;;  %v2033_v15 = vcombine.high %v415_v12, %v415_v12 }
 0x1b4   :  { %2220 = vmatmul.mubr.msk.bf16.vlgmr.msra.gmra.mxu0 %vm459_vm1, %v2020_v8  ;;  %2226 = vmatmul.mubr.msk.bf16.vlgmr.msra.gmra.mxu1 %vm459_vm1, %v2021_v9 }
 0x1b5   :  { %2230 = vmatpush3.bf16.xpose.msra.mxu0 %v648_v10  ;;  %2236 = vmatpush3.bf16.xpose.msra.mxu1 %v694_v11  ;;  %v740_v18 = vsel %vm459_vm1, %v2032_v14, 0  ;;  %v786_v19 = vsel %vm459_vm1, %v2033_v15, 0 }
 0x1b6   :  { %2231 = vmatprep.mubr.msk.bf16.mxu0 %vm2635_vm0, %v2634_v1  ;;  %2237 = vmatprep.mubr.msk.bf16.mxu1 %vm2635_vm0, %v2634_v1 }
 0x1b7   :  { %2241 = vmatprep.subr.bf16.mxu0 %v2634_v1  ;;  %2247 = vmatprep.subr.bf16.mxu1 %v2634_v1 }
 0x1bc   :  { %2232 = vmatmul.mubr.msk.bf16.vlgmr.msra.gmra.mxu0 %vm459_vm1, %v2022_v16  ;;  %2238 = vmatmul.mubr.msk.bf16.vlgmr.msra.gmra.mxu1 %vm459_vm1, %v2023_v17 }
 0x1bd   :  { %2242 = vmatpush3.bf16.xpose.msra.mxu0 %v740_v18  ;;  %2248 = vmatpush3.bf16.xpose.msra.mxu1 %v786_v19 }
 0x1be   :  { %2243 = vmatprep.mubr.msk.bf16.mxu0 %vm2635_vm0, %v2634_v1  ;;  %2249 = vmatprep.mubr.msk.bf16.mxu1 %vm2635_vm0, %v2634_v1 }
 0x1bf   :  { %2253 = vmatprep.subr.bf16.mxu0 %v2634_v1  ;;  %2259 = vmatprep.subr.bf16.mxu1 %v2634_v1 }
 0x1c4   :  { %2244 = vmatmul.mubr.msk.bf16.vlgmr.msra.gmra.mxu0 %vm459_vm1, %v2024_v25  ;;  %2250 = vmatmul.mubr.msk.bf16.vlgmr.msra.gmra.mxu1 %vm459_vm1, %v2025_v26 }
 0x1c5   :  { %2254 = vmatpush3.bf16.msra.mxu0 %v930_v27  ;;  %2260 = vmatpush3.bf16.msra.mxu1 %v976_v28 }
 0x1c6   :  { %2255 = vmatprep.mubr.msk.bf16.mxu0 %vm2635_vm0, %v2634_v1  ;;  %2265 = vmatprep.subr.bf16.mxu0 %v2634_v1 }
 0x1c7   :  { %2261 = vmatprep.mubr.msk.bf16.mxu1 %vm2635_vm0, %v2634_v1  ;;  %2271 = vmatprep.subr.bf16.mxu1 %v2634_v1 }
 0x1fb   :  { %v500_v37 = vpop.f32.mrf.mxu0 }
 0x1fc   :  { %v501_v38 = vadd.f32 %v500_v37, %v457_v34 }
 0x1fd   :  { %v2209_v40 = vpop.f32.mrf.mxu0 }
 0x1fe   :  { %v829_v41 = vsel %vm828_vm3, %v501_v38, -inf }
 0x1ff   :  { %v503_v42 = vpop.f32.mrf.mxu0  ;;  %v546_v43 = vpop.f32.mrf.mxu1  ;;  %830 = vmax.xlane.f32.xlu1 %v829_v41 }
 0x200   :  { %v547_v44 = vadd.f32 %v546_v43, %v458_v39 }
 0x201   :  { %v2210_v45 = vpop.f32.mrf.mxu0  ;;  %v2215_v46 = vpop.f32.mrf.mxu1 }
 0x202   :  { %v832_v47 = vsel %vm828_vm3, %v547_v44, -inf }
 0x203   :  { %v549_v48 = vpop.f32.mrf.mxu1  ;;  %833 = vmax.xlane.f32.xlu0 %v832_v47 }
 0x205   :  { %v2216_v49 = vpop.f32.mrf.mxu1 }
 0x274   :  { %v592_v50 = vpop.f32.mrf.mxu0  ;;  %v638_v51 = vpop.f32.mrf.mxu1 }
 0x275   :  { %v639_v53 = vadd.f32 %v638_v51, %v458_v39  ;;  %v593_v56 = vadd.f32 %v592_v50, %v457_v34 }
 0x276   :  { %v2221_v54 = vpop.f32.mrf.mxu0  ;;  %v2227_v55 = vpop.f32.mrf.mxu1 }
 0x277   :  { %v838_v57 = vsel %vm828_vm3, %v639_v53, -inf  ;;  %v835_v63 = vsel %vm828_vm3, %v593_v56, -inf }
 0x278   :  { %839 = vmax.xlane.f32.xlu0 %v838_v57  ;;  %v595_v58 = vpop.f32.mrf.mxu0  ;;  %v641_v59 = vpop.f32.mrf.mxu1 }
 0x27a   :  { %v2222_v61 = vpop.f32.mrf.mxu0  ;;  %v2228_v62 = vpop.f32.mrf.mxu1 }
 0x27c   :  { %v730_v2 = vpop.f32.mrf.mxu1  ;;  %836 = vmax.xlane.f32.xlu0 %v835_v63  ;;  %v684_v3 = vpop.f32.mrf.mxu0 }
 0x27d   :  { %v731_v4 = vadd.f32 %v730_v2, %v458_v39  ;;  %v685_v5 = vadd.f32 %v684_v3, %v457_v34 }
 0x27e   :  { %v2233_v6 = vpop.f32.mrf.mxu0  ;;  %v2239_v7 = vpop.f32.mrf.mxu1 }
 0x27f   :  { %v844_v8 = vsel %vm828_vm3, %v731_v4, -inf  ;;  %v841_v9 = vsel %vm828_vm3, %v685_v5, -inf }
 0x280   :  { %845 = vmax.xlane.f32.xlu1 %v844_v8  ;;  %v733_v10 = vpop.f32.mrf.mxu1  ;;  %842 = vmax.xlane.f32.xlu0 %v841_v9  ;;  %v687_v11 = vpop.f32.mrf.mxu0 }
 0x282   :  { %v2234_v12 = vpop.f32.mrf.mxu0  ;;  %v2240_v13 = vpop.f32.mrf.mxu1 }
 0x284   :  { %v776_v14 = vpop.f32.mrf.mxu0  ;;  %v822_v15 = vpop.f32.mrf.mxu1 }
 0x285   :  { %v777_v16 = vadd.f32 %v776_v14, %v457_v34  ;;  %v823_v17 = vadd.f32 %v822_v15, %v458_v39 }
 0x286   :  { %v2245_v18 = vpop.f32.mrf.mxu0  ;;  %v2251_v19 = vpop.f32.mrf.mxu1 }
 0x287   :  { %v850_v20 = vsel %vm828_vm3, %v823_v17, -inf  ;;  %v847_v21 = vsel %vm828_vm3, %v777_v16, -inf }
 0x288   :  { %v831_v22 = vpop.xlane.xlu1 %830  ;;  %851 = vmax.xlane.f32.xlu1 %v850_v20  ;;  %v825_v25 = vpop.f32.mrf.mxu1  ;;  %848 = vmax.xlane.f32.xlu0 %v847_v21 }
 0x289   :  { %v853_v26 = vsub.f32 %v501_v38, %v831_v22  ;;  %v779_v27 = vpop.f32.mrf.mxu0 }
 0x28a   :  { %v2252_v28 = vpop.f32.mrf.mxu1 }
 0x28b   :  { %v861_v29 = vmul.f32 1.442695, %v853_v26  ;;  %v2246_v32 = vpop.f32.mrf.mxu0 }
 0x28c   :  { %v834_v36 = vpop.xlane.xlu0 %833 }
 0x28d   :  { %2431 = vpow2.f32 %v861_v29  ;;  %v854_v37 = vsub.f32 %v547_v44, %v834_v36 }
 0x28f   :  { %v863_v39 = vmul.f32 1.442695, %v854_v37 }
 0x291   :  { %2433 = vpow2.f32 %v863_v39 }
 0x299   :  { %433 = vrot.lane.b32.xlu1 %v2777_v60, %s2636_s3 }
 0x29a   :  { %v2432_v33 = vpop.eup %2431 }
 0x29b   :  { %v877_v34 = vsel %vm828_vm3, %v2432_v33, 0.0 }
 0x29c   :  { %878 = vadd.xlane.f32.xlu0 %v877_v34 }
 0x29e   :  { %v2824_v40 = vpop.eup %2433 }
 0x29f   :  { %v880_v38 = vsel %vm828_vm3, %v2824_v40, 0.0 }
 0x2bd   :  { %881 = vadd.xlane.f32.xlu1 %v880_v38 }
 0x301   :  { %v840_v41 = vpop.xlane.xlu0 %839 }
 0x302   :  { %v856_v42 = vsub.f32 %v639_v53, %v840_v41 }
 0x304   :  { %v867_v43 = vmul.f32 1.442695, %v856_v42 }
 0x305   :  { %v837_v45 = vpop.xlane.xlu0 %836 }
 0x306   :  { %2435 = vpow2.f32 %v867_v43  ;;  %v855_v46 = vsub.f32 %v593_v56, %v837_v45 }
 0x308   :  { %v865_v47 = vmul.f32 1.442695, %v855_v46 }
 0x309   :  { %v846_v48 = vpop.xlane.xlu1 %845  ;;  %v843_v49 = vpop.xlane.xlu0 %842 }
 0x30a   :  { %2437 = vpow2.f32 %v865_v47  ;;  %v858_v50 = vsub.f32 %v731_v4, %v846_v48  ;;  %v857_v44 = vsub.f32 %v685_v5, %v843_v49 }
 0x30c   :  { %v871_v51 = vmul.f32 1.442695, %v858_v50  ;;  %v869_v54 = vmul.f32 1.442695, %v857_v44 }
 0x30e   :  { %2439 = vpow2.f32 %v871_v51 }
 0x30f   :  { %2441 = vpow2.f32 %v869_v54 }
 0x311   :  { %v852_v55 = vpop.xlane.xlu1 %851  ;;  %v849_v57 = vpop.xlane.xlu0 %848 }
 0x312   :  { %v860_v58 = vsub.f32 %v823_v17, %v852_v55  ;;  %v859_v59 = vsub.f32 %v777_v16, %v849_v57 }
 0x313   :  { %v2436_v61 = vpop.eup %2435 }
 0x314   :  { %v875_v53 = vmul.f32 1.442695, %v860_v58  ;;  %v873_v62 = vmul.f32 1.442695, %v859_v59  ;;  %v886_v63 = vsel %vm828_vm3, %v2436_v61, 0.0 }
 0x315   :  { %887 = vadd.xlane.f32.xlu1 %v886_v63  ;;  %v434_v12 = vpop.permute.xlu1 %433 }
 0x316   :  { %2443 = vpow2.f32 %v875_v53  ;;  %v2036_v14 = vcombine.low %v434_v12, %v434_v12  ;;  %v2037_v20 = vcombine.high %v434_v12, %v434_v12 }
 0x317   :  { %v2438_v56 = vpop.eup %2437  ;;  %2445 = vpow2.f32 %v873_v62 }
 0x318   :  { %v883_v2 = vsel %vm828_vm3, %v2438_v56, 0.0  ;;  %v1022_v17 = vsel %vm928_vm2, %v2036_v14, 0  ;;  %v1068_v25 = vsel %vm928_vm2, %v2037_v20, 0 }
 0x319   :  { %884 = vadd.xlane.f32.xlu0 %v883_v2 }
 0x31b   :  { %v2830_v3 = vpop.eup %2439 }
 0x31c   :  { %v2832_v4 = vpop.eup %2441  ;;  %v892_v5 = vsel %vm828_vm3, %v2830_v3, 0.0 }
 0x31d   :  { %893 = vadd.xlane.f32.xlu1 %v892_v5  ;;  %v889_v6 = vsel %vm828_vm3, %v2832_v4, 0.0  ;;  %v2386_v5 = vld [vmem:[#allocation8 + $0x10] sm:$0xff]  }
 0x31e   :  { %890 = vadd.xlane.f32.xlu0 %v889_v6 }
 0x323   :  { %v2838_v7 = vpop.eup %2443 }
 0x324   :  { %v2840_v8 = vpop.eup %2445  ;;  %v898_v9 = vsel %vm828_vm3, %v2838_v7, 0.0 }
 0x325   :  { %899 = vadd.xlane.f32.xlu1 %v898_v9  ;;  %v895_v10 = vsel %vm828_vm3, %v2840_v8, 0.0  ;;  %v879_v11 = vpop.xlane.xlu0 %878 }
 0x326   :  { %896 = vadd.xlane.f32.xlu0 %v895_v10  ;;  %2447 = vrcp.f32 %v879_v11 }
 0x333   :  { %v2448_v13 = vpop.eup %2447 }
 0x334   :  { %v909_v15 = vmul.f32 %v2448_v13, %v2432_v33 }
 0x336   :  { %437 = vrot.lane.b32.xlu1 %v2777_v60, %s2637_s20  ;;  %v917_v16 = vpack.c.bf16 %v909_v15, %v909_v15  ;;  %v2389_v15 = vld [vmem:[#allocation8 + $0x38] sm:$0xff]  }
 0x338   :  { %2256 = vmatmul.mubr.msk.bf16.vlgmr.msra.gmra.mxu0 %vm828_vm3, %v917_v16 }
 0x339   :  { %2266 = vmatpush3.bf16.msra.mxu0 %v1022_v17  ;;  %2267 = vmatprep.mubr.msk.bf16.mxu0 %vm2635_vm0, %v2634_v1 }
 0x33a   :  { %2277 = vmatprep.subr.bf16.mxu0 %v2634_v1 }
 0x33c   :  { %435 = vrot.lane.b32.xlu0 %v2777_v60, %s2625_s19 }
 0x346   :  { %v882_v18 = vpop.xlane.xlu1 %881 }
 0x347   :  { %2449 = vrcp.f32 %v882_v18 }
 0x354   :  { %v2450_v19 = vpop.eup %2449 }
 0x355   :  { %v910_v21 = vmul.f32 %v2450_v19, %v2824_v40  ;;  %v2390_v19 = vld [vmem:[#allocation8 + $0x30] sm:$0xff]  }
 0x357   :  { %v918_v22 = vpack.c.bf16 %v910_v21, %v910_v21 }
 0x359   :  { %2262 = vmatmul.mubr.msk.bf16.vlgmr.msra.gmra.mxu1 %vm828_vm3, %v918_v22 }
 0x35a   :  { %2272 = vmatpush3.bf16.msra.mxu1 %v1068_v25  ;;  %2273 = vmatprep.mubr.msk.bf16.mxu1 %vm2635_vm0, %v2634_v1 }
 0x35b   :  { %2283 = vmatprep.subr.bf16.mxu1 %v2634_v1 }
 0x39e   :  { %v888_v26 = vpop.xlane.xlu1 %887 }
 0x39f   :  { %2451 = vrcp.f32 %v888_v26 }
 0x3a2   :  { %v885_v60 = vpop.xlane.xlu0 %884 }
 0x3a3   :  { %2453 = vrcp.f32 %v885_v60 }
 0x3a6   :  { %v894_v27 = vpop.xlane.xlu1 %893 }
 0x3a7   :  { %2455 = vrcp.f32 %v894_v27  ;;  %v891_v28 = vpop.xlane.xlu0 %890 }
 0x3a8   :  { %2457 = vrcp.f32 %v891_v28  ;;  %v2387_v28 = vld [vmem:[#allocation8 + $0x28] sm:$0xff]  }
 0x3ac   :  { %v2452_v29 = vpop.eup %2451 }
 0x3ad   :  { %v912_v32 = vmul.f32 %v2452_v29, %v2436_v61 }
 0x3ae   :  { %v900_v33 = vpop.xlane.xlu1 %899 }
 0x3af   :  { %2459 = vrcp.f32 %v900_v33  ;;  %v897_v34 = vpop.xlane.xlu0 %896  ;;  %v920_v36 = vpack.c.bf16 %v912_v32, %v912_v32 }
 0x3b0   :  { %v2454_v37 = vpop.eup %2453  ;;  %2461 = vrcp.f32 %v897_v34 }
 0x3b1   :  { %2274 = vmatmul.mubr.msk.bf16.vlgmr.msra.gmra.mxu1 %vm828_vm3, %v920_v36  ;;  %v911_v39 = vmul.f32 %v2454_v37, %v2438_v56  ;;  %v2383_v56 = vld [vmem:[#allocation8 + $0x8] sm:$0xff]   ;;  %v2388_v37 = vld [vmem:[#allocation8 + $0x20] sm:$0xff]  }
 0x3b2   :  { %2285 = vmatprep.mubr.msk.bf16.mxu1 %vm2635_vm0, %v2634_v1  ;;  %v438_v40 = vpop.permute.xlu1 %437 }
 0x3b3   :  { %v436_v38 = vpop.permute.xlu0 %435  ;;  %v919_v41 = vpack.c.bf16 %v911_v39, %v911_v39  ;;  %v2041_v48 = vcombine.high %v438_v40, %v438_v40  ;;  %v2040_v54 = vcombine.low %v438_v40, %v438_v40 }
 0x3b4   :  { %v2456_v42 = vpop.eup %2455  ;;  %v2038_v43 = vcombine.low %v436_v38, %v436_v38  ;;  %v2039_v45 = vcombine.high %v436_v38, %v436_v38 }
 0x3b5   :  { %v2458_v46 = vpop.eup %2457  ;;  %2268 = vmatmul.mubr.msk.bf16.vlgmr.msra.gmra.mxu0 %vm828_vm3, %v919_v41  ;;  %v914_v47 = vmul.f32 %v2456_v42, %v2830_v3  ;;  %v1252_v55 = vsel %vm928_vm2, %v2041_v48, 0  ;;  %v1206_v61 = vsel %vm928_vm2, %v2040_v54, 0  ;;  %v2384_v3 = vld [vmem:[#allocation8] sm:$0xff]  }
 0x3b6   :  { %v1114_v49 = vsel %vm928_vm2, %v2038_v43, 0  ;;  %v1160_v50 = vsel %vm928_vm2, %v2039_v45, 0  ;;  %2279 = vmatprep.mubr.msk.bf16.mxu0 %vm2635_vm0, %v2634_v1  ;;  %v913_v51 = vmul.f32 %v2458_v46, %v2832_v4  ;;  %v2385_v4 = vld [vmem:[#allocation8 + $0x18] sm:$0xff]  }
 0x3b7   :  { %2278 = vmatpush3.bf16.msra.mxu0 %v1114_v49  ;;  %2284 = vmatpush3.bf16.msra.mxu1 %v1160_v50  ;;  %v922_v44 = vpack.c.bf16 %v914_v47, %v914_v47 }
 0x3b8   :  { %2295 = vmatprep.subr.bf16.mxu1 %v2634_v1  ;;  %2289 = vmatprep.subr.bf16.mxu0 %v2634_v1  ;;  %v921_v57 = vpack.c.bf16 %v913_v51, %v913_v51 }
 0x3ba   :  { %2286 = vmatmul.mubr.msk.bf16.vlgmr.msra.gmra.mxu1 %vm828_vm3, %v922_v44 }
 0x3bb   :  { %2296 = vmatpush3.bf16.msra.mxu1 %v1252_v55  ;;  %2297 = vmatprep.mubr.msk.bf16.mxu1 %vm2635_vm0, %v2634_v1 }
 0x3bc   :  { %v2460_v58 = vpop.eup %2459  ;;  %2309 = vmatprep.subr.bf16.mxu1 %v2634_v1 }
 0x3bd   :  { %v2462_v59 = vpop.eup %2461  ;;  %2280 = vmatmul.mubr.msk.bf16.vlgmr.msra.gmra.mxu0 %vm828_vm3, %v921_v57  ;;  %v916_v53 = vmul.f32 %v2460_v58, %v2838_v7 }
 0x3be   :  { %2290 = vmatpush3.bf16.msra.mxu0 %v1206_v61  ;;  %2291 = vmatprep.mubr.msk.bf16.mxu0 %vm2635_vm0, %v2634_v1  ;;  %v915_v63 = vmul.f32 %v2462_v59, %v2840_v8 }
 0x3bf   :  { %v924_v62 = vpack.c.bf16 %v916_v53, %v916_v53  ;;  %2301 = vmatprep.subr.bf16.mxu0 %v2634_v1 }
 0x3c0   :  { %v923_v2 = vpack.c.bf16 %v915_v63, %v915_v63 }
 0x3c2   :  { %2298 = vmatmul.mubr.msk.bf16.vlgmr.msra.gmra.mxu1 %vm828_vm3, %v924_v62 }
 0x3c3   :  { %2310 = vmatpush3.bf16.msra.mxu1 %v2383_v56  ;;  %2313 = vmatprep.mubr.msk.bf16.mxu1 %vm2635_vm0, %v2634_v1 }
 0x3c4   :  { %2311 = vmatprep.subr.bf16.mxu1 %v2634_v1 }
 0x3c5   :  { %2292 = vmatmul.mubr.msk.bf16.vlgmr.msra.gmra.mxu0 %vm828_vm3, %v923_v2 }
 0x3c6   :  { %2305 = vmatprep.mubr.msk.bf16.mxu0 %vm2635_vm0, %v2634_v1  ;;  %2302 = vmatpush3.bf16.msra.mxu0 %v2385_v4 }
 0x3c7   :  { %2312 = vmatpush3.bf16.msra.mxu1 %v2384_v3  ;;  %2303 = vmatprep.subr.bf16.mxu0 %v2634_v1 }
 0x3c8   :  { %2325 = vmatprep.subr.bf16.mxu1 %v2634_v1 }
 0x3ca   :  { %2304 = vmatpush3.bf16.msra.mxu0 %v2386_v5 }
 0x3cb   :  { %2317 = vmatprep.subr.bf16.mxu0 %v2634_v1 }
 0x3f8   :  { %v966_v6 = vpop.f32.mrf.mxu0 }
 0x3f9   :  { %v1294_v13 = vpack.c.bf16 %v966_v6, %v966_v6 }
 0x3fa   :  { %v2257_v7 = vpop.f32.mrf.mxu0 }
 0x3fc   :  { %v969_v8 = vpop.f32.mrf.mxu0 }
 0x3fe   :  { %v2258_v9 = vpop.f32.mrf.mxu0 }
 0x419   :  { %v1012_v10 = vpop.f32.mrf.mxu1 }
 0x41a   :  { %v1295_v11 = vpack.c.bf16 %v1012_v10, %v1012_v10  ;;  %v2913_v10 = vld [vmem:[%s2959_s8] sm:$0xff] }
 0x41b   :  { %v2263_v12 = vpop.f32.mrf.mxu1 }
 0x41c   :  { %v1319_v14 = vrot.slane %v1295_v11, 4 }
 0x41d   :  { %v1015_v16 = vpop.f32.mrf.mxu1 }
 0x41e   :  { %v1322_v17 = vsel %vm928_vm2, %v1294_v13, %v1319_v14 }
 0x41f   :  { %v2264_v18 = vpop.f32.mrf.mxu1  ;;  %2314 = vmatmul.mubr.msk.bf16.vlgmr.msra.gmra.mxu1 %vm459_vm1, %v1322_v17 }
 0x420   :  { %2326 = vmatpush3.bf16.msra.mxu1 %v2389_v15  ;;  %2329 = vmatprep.mubr.msk.bf16.mxu1 %vm2635_vm0, %v2634_v1  ;;  %v1565_v15 = vrot.slane %v2913_v10, %v2755_v35 }
 0x421   :  { %2327 = vmatprep.subr.bf16.mxu1 %v2634_v1 }
 0x424   :  { %2328 = vmatpush3.bf16.msra.mxu1 %v2390_v19 }
 0x471   :  { %v1104_v20 = vpop.f32.mrf.mxu1 }
 0x472   :  { %v1297_v21 = vpack.c.bf16 %v1104_v20, %v1104_v20 }
 0x473   :  { %v2275_v22 = vpop.f32.mrf.mxu1 }
 0x474   :  { %v1324_v60 = vrot.slane %v1297_v21, 4 }
 0x475   :  { %v1058_v25 = vpop.f32.mrf.mxu0  ;;  %v1107_v26 = vpop.f32.mrf.mxu1 }
 0x476   :  { %v1296_v27 = vpack.c.bf16 %v1058_v25, %v1058_v25 }
 0x477   :  { %v2269_v29 = vpop.f32.mrf.mxu0  ;;  %v2276_v32 = vpop.f32.mrf.mxu1 }
 0x478   :  { %v1327_v33 = vsel %vm928_vm2, %v1296_v27, %v1324_v60  ;;  %v2391_v29 = vld [vmem:[#allocation10 + $0x70] ss:$8 sps:$4 sm:$0xff]   ;;  %v2393_v32 = vld [vmem:[#allocation10 + $0x74] ss:$8 sps:$4 sm:$0xff]  }
 0x479   :  { %v1061_v34 = vpop.f32.mrf.mxu0  ;;  %2306 = vmatmul.mubr.msk.bf16.vlgmr.msra.gmra.mxu0 %vm459_vm1, %v1327_v33 }
 0x47a   :  { %v1196_v36 = vpop.f32.mrf.mxu1  ;;  %2318 = vmatpush3.bf16.msra.mxu0 %v2387_v28  ;;  %2321 = vmatprep.mubr.msk.bf16.mxu0 %vm2635_vm0, %v2634_v1 }
 0x47b   :  { %v1299_v39 = vpack.c.bf16 %v1196_v36, %v1196_v36  ;;  %v2270_v40 = vpop.f32.mrf.mxu0  ;;  %2319 = vmatprep.subr.bf16.mxu0 %v2634_v1 }
 0x47c   :  { %v2287_v38 = vpop.f32.mrf.mxu1 }
 0x47d   :  { %v1150_v41 = vpop.f32.mrf.mxu0  ;;  %v1439_v42 = vrot.slane %v1299_v39, 4  ;;  %v2396_v38 = vld [vmem:[#allocation10 + $0x64] ss:$8 sps:$4 sm:$0xff]  }
 0x47e   :  { %v1298_v43 = vpack.c.bf16 %v1150_v41, %v1150_v41  ;;  %v1199_v45 = vpop.f32.mrf.mxu1  ;;  %2320 = vmatpush3.bf16.msra.mxu0 %v2388_v37  ;;  %v2394_v41 = vld [vmem:[#allocation10 + $0x60] ss:$8 sps:$4 sm:$0xff]  }
 0x47f   :  { %v2281_v46 = vpop.f32.mrf.mxu0  ;;  %1714 = vmatprep.subr.bf16.mxu0 %v2393_v32  ;;  %v2400_v45 = vld [vmem:[#allocation10 + $0x40] ss:$8 sps:$4 sm:$0xff]  }
 0x480   :  { %v1442_v47 = vsel %vm928_vm2, %v1298_v43, %v1439_v42  ;;  %v2288_v48 = vpop.f32.mrf.mxu1  ;;  %v2399_v42 = vld [vmem:[#allocation10 + $0x54] ss:$8 sps:$4 sm:$0xff]   ;;  %v2397_v43 = vld [vmem:[#allocation10 + $0x50] ss:$8 sps:$4 sm:$0xff]   ;;  %v2402_v46 = vld [vmem:[#allocation10 + $0x44] ss:$8 sps:$4 sm:$0xff]  }
 0x481   :  { %v1153_v49 = vpop.f32.mrf.mxu0  ;;  %2322 = vmatmul.mubr.msk.bf16.vlgmr.msra.gmra.mxu0 %vm459_vm1, %v1442_v47  ;;  %v2405_v47 = vld [vmem:[#allocation10 + $0x34] ss:$8 sps:$4 sm:$0xff]   ;;  %v2403_v48 = vld [vmem:[#allocation10 + $0x30] ss:$8 sps:$4 sm:$0xff]  }
 0x482   :  { %v1288_v50 = vpop.f32.mrf.mxu1  ;;  %1746 = vmatprep.mubr.bf16.mxu0 %v2633_v0  ;;  %1715 = vmatpush1.bf16.msra.mxu0 %v2391_v29  ;;  %v2408_v49 = vld [vmem:[#allocation10 + $0x24] ss:$8 sps:$4 sm:$0xff]  }
 0x483   :  { %v1301_v44 = vpack.c.bf16 %v1288_v50, %v1288_v50  ;;  %v2282_v51 = vpop.f32.mrf.mxu0  ;;  %1716 = vmatprep.subr.bf16.mxu0 %v2396_v38  ;;  %v2406_v50 = vld [vmem:[#allocation10 + $0x20] ss:$8 sps:$4 sm:$0xff]  }
 0x484   :  { %v2299_v54 = vpop.f32.mrf.mxu1  ;;  %v2409_v51 = vld [vmem:[#allocation10 + $0x10] ss:$8 sps:$4 sm:$0xff]  }
 0x485   :  { %v1242_v1 = vpop.f32.mrf.mxu0  ;;  %v1501_v55 = vrot.slane %v1301_v44, 4  ;;  %v2411_v44 = vld [vmem:[#allocation10 + $0x14] ss:$8 sps:$4 sm:$0xff]   ;;  %v2414_v54 = vld [vmem:[#allocation10 + $0x4] ss:$8 sps:$4 sm:$0xff]  }
 0x486   :  { %v1300_v57 = vpack.c.bf16 %v1242_v1, %v1242_v1  ;;  %v1291_v58 = vpop.f32.mrf.mxu1  ;;  %1717 = vmatpush1.bf16.msra.mxu0 %v2394_v41  ;;  %v2412_v1 = vld [vmem:[#allocation10] ss:$8 sps:$4 sm:$0xff]  }
 0x487   :  { %v2293_v59 = vpop.f32.mrf.mxu0  ;;  %1718 = vmatprep.subr.bf16.mxu0 %v2399_v42  ;;  %v2417_v58 = vld [vmem:[#allocation11 + $0x70] sm:$0xff]  }
 0x488   :  { %v1504_v61 = vsel %vm928_vm2, %v1300_v57, %v1501_v55  ;;  %v2300_v53 = vpop.f32.mrf.mxu1  ;;  %v2415_v55 = vld [vmem:[#allocation11 + $0x78] sm:$0xff]   ;;  %v2418_v59 = vld [vmem:[#allocation11 + $0x30] sm:$0xff]  }
 0x489   :  { %v1245_v62 = vpop.f32.mrf.mxu0  ;;  %2330 = vmatmul.mubr.msk.bf16.vlgmr.msra.gmra.mxu1 %vm459_vm1, %v1504_v61  ;;  %v2416_v57 = vld [vmem:[#allocation11 + $0x38] sm:$0xff]   ;;  %2163 = vmatprep.subr.bf16.mxu1 %v2415_v55  ;;  %v2419_v61 = vld [vmem:[#allocation11 + $0x68] sm:$0xff]  }
 0x48a   :  { %1719 = vmatpush1.bf16.msra.mxu0 %v2397_v43  ;;  %2164 = vmatpush3.bf16.msra.mxu1 %v2416_v57  ;;  %v2420_v53 = vld [vmem:[#allocation11 + $0x28] sm:$0xff]   ;;  %v2421_v62 = vld [vmem:[#allocation11 + $0x60] sm:$0xff]  }
 0x48b   :  { %v2294_v63 = vpop.f32.mrf.mxu0  ;;  %1720 = vmatprep.subr.bf16.mxu0 %v2402_v46  ;;  %2165 = vmatprep.subr.bf16.mxu1 %v2417_v58 }
 0x48c   :  { %v2422_v63 = vld [vmem:[#allocation11 + $0x20] sm:$0xff]  }
 0x48e   :  { %1721 = vmatpush1.bf16.msra.mxu0 %v2400_v45  ;;  %2166 = vmatpush3.bf16.msra.mxu1 %v2418_v59 }
 0x48f   :  { %1722 = vmatprep.subr.bf16.mxu0 %v2405_v47  ;;  %2167 = vmatprep.subr.bf16.mxu1 %v2419_v61  ;;  %v1798_v47 = vrot.slane %v2913_v10, %v2748_v31 }
 0x492   :  { %1723 = vmatpush1.bf16.msra.mxu0 %v2403_v48  ;;  %2168 = vmatpush3.bf16.msra.mxu1 %v2420_v53 }
 0x493   :  { %1724 = vmatprep.subr.bf16.mxu0 %v2408_v49  ;;  %2169 = vmatprep.subr.bf16.mxu1 %v2421_v62 }
 0x496   :  { %1725 = vmatpush1.bf16.msra.mxu0 %v2406_v50  ;;  %2170 = vmatpush3.bf16.msra.mxu1 %v2422_v63 }
 0x497   :  { %1726 = vmatprep.subr.bf16.mxu0 %v2411_v44 }
 0x49a   :  { %1727 = vmatpush1.bf16.msra.mxu0 %v2409_v51 }
 0x49b   :  { %1728 = vmatprep.subr.bf16.mxu0 %v2414_v54 }
 0x49e   :  { %1729 = vmatpush1.bf16.msra.mxu0 %v2412_v1 }
 0x4df   :  { %v1431_v56 = vpop.f32.mrf.mxu1 }
 0x4e1   :  { %v2315_v2 = vpop.f32.mrf.mxu1 }
 0x4e2   :  { %v2424_v2 = vld [vmem:[#allocation11 + $0x18] sm:$0xff]  }
 0x4e3   :  { %v1434_v3 = vpop.f32.mrf.mxu1 }
 0x4e5   :  { %v2316_v4 = vpop.f32.mrf.mxu1 }
 0x539   :  { %v1376_v0 = vpop.f32.mrf.mxu0 }
 0x53a   :  { %v1432_v12 = vadd.f32 %v1431_v56, %v1376_v0  ;;  %v2423_v56 = vld [vmem:[#allocation11 + $0x58] sm:$0xff]  }
 0x53b   :  { %v2307_v5 = vpop.f32.mrf.mxu0  ;;  %2171 = vmatprep.subr.bf16.mxu1 %v2423_v56 }
 0x53c   :  { %2172 = vmatpush3.bf16.msra.mxu1 %v2424_v2 }
 0x53d   :  { %v1379_v6 = vpop.f32.mrf.mxu0 }
 0x53e   :  { %v1435_v17 = vadd.f32 %v1434_v3, %v1379_v6 }
 0x53f   :  { %v2308_v7 = vpop.f32.mrf.mxu0 }
 0x541   :  { %v1491_v8 = vpop.f32.mrf.mxu0 }
 0x542   :  { %v1498_v14 = vadd.f32 %v1491_v8, %v1432_v12  ;;  %v1601_v12 = vsub.s32 3, %v2745_v30 }
 0x543   :  { %v2323_v9 = vpop.f32.mrf.mxu0 }
 0x544   :  { %v1596_v9 = vrot.slane %v2913_v10, %v166_v52  ;;  %v2427_v52 = vld [vmem:[#allocation11 + $0x48] sm:$0xff]  }
 0x545   :  { %v1494_v11 = vpop.f32.mrf.mxu0 }
 0x546   :  { %v1499_v20 = vadd.f32 %v1494_v11, %v1435_v17 }
 0x547   :  { %v2324_v13 = vpop.f32.mrf.mxu0 }
 0x549   :  { %v1553_v16 = vpop.f32.mrf.mxu1 }
 0x54a   :  { %v1560_v18 = vadd.f32 %v1553_v16, %v1498_v14  ;;  %v1602_v16 = vrot.slane %v2913_v10, %v1601_v12 }
 0x54b   :  { %v2331_v19 = vpop.f32.mrf.mxu1 }
 0x54c   :  { %v1566_v21 = vadd.f32 %v1565_v15, %v1560_v18 }
 0x54d   :  { %v1556_v22 = vpop.f32.mrf.mxu1 }
 0x54e   :  { %v1561_v25 = vadd.f32 %v1556_v22, %v1499_v20  ;;  %v1568_v26 = vadd.f32 %v1566_v21, %v2727_v23  ;;  %v2425_v21 = vld [vmem:[#allocation11 + $0x50] sm:$0xff]  }
 0x54f   :  { %v2332_v60 = vpop.f32.mrf.mxu1  ;;  %v2426_v22 = vld [vmem:[#allocation11 + $0x10] sm:$0xff]   ;;  %2173 = vmatprep.subr.bf16.mxu1 %v2425_v21 }
 0x550   :  { %v1567_v27 = vadd.f32 %v1565_v15, %v1561_v25  ;;  %1570 = vadd.xlane.f32.xlu1 %v1568_v26  ;;  %2174 = vmatpush3.bf16.msra.mxu1 %v2426_v22  ;;  %v2428_v25 = vld [vmem:[#allocation11 + $0x8] sm:$0xff]   ;;  %v2430_v60 = vld [vmem:[#allocation11] sm:$0xff]  }
 0x551   :  { %2175 = vmatprep.subr.bf16.mxu1 %v2427_v52 }
 0x552   :  { %v1569_v28 = vadd.f32 %v1567_v27, %v2729_v24  ;;  %v1622_v27 = vld [vmem:[%s2957_s6] sm:$0x3]  ;;  %s2638_s6 = smov [#allocation13]  }
 0x553   :  { %v1631_v29 = vrot.slane %v1622_v27, %v2748_v31  ;;  %v1627_v32 = vrot.slane %v1622_v27, %v2755_v35  ;;  %s1979_s1 = sshll.u32 %s2638_s6, 4  ;;  %s1980_s1 = int_to_ptr.vmem [resolvable:$true] %s1979_s1 }
 0x554   :  { %1572 = vadd.xlane.f32.xlu0 %v1569_v28  ;;  %2176 = vmatpush3.bf16.msra.mxu1 %v2428_v25  ;;  %s2591_s26 = scalar_lea.vmem %s1980_s1, 256  ;;  %p2596_p3 = scmp.lt.s32.totalorder %s1980_s1, %s1980_s1 }
 0x555   :  { %p2592_p2 = scmp.ne.s32.totalorder %s1980_s1, %s2591_s26  ;;  %p2597_p4 = scmp.lt.s32.totalorder %s2591_s26, %s2591_s26 }
 0x557   :  { %p2598_p5 = por %p2597_p4, %p2596_p3 }
 0x559   :  { %p2599_p6 = pnand %p2598_p5, %p2592_p2 }
 0x5d9   :  { %v1571_v33 = vpop.xlane.xlu1 %1570 }
 0x5da   :  { %v1575_v34 = vmul.f32 0.0078125, %v1571_v33 }
 0x5dc   :  { %v2919_v36 = vsub.f32 %v1568_v26, %v1575_v34  ;;  %v2429_v26 = vld [vmem:[#allocation11 + $0x40] sm:$0xff]  }
 0x5dd   :  { %v1573_v37 = vpop.xlane.xlu0 %1572  ;;  %2177 = vmatprep.subr.bf16.mxu1 %v2429_v26 }
 0x5de   :  { %v1576_v39 = vmul.f32 0.0078125, %v1573_v37  ;;  %v1579_v40 = vmul.f32 %v2919_v36, %v2919_v36  ;;  %2178 = vmatpush3.bf16.msra.mxu1 %v2430_v60 }
 0x5e0   :  { %v2923_v23 = vsub.f32 %v1569_v28, %v1576_v39  ;;  %1581 = vadd.xlane.f32.xlu0 %v1579_v40 }
 0x5e2   :  { %v1580_v24 = vmul.f32 %v2923_v23, %v2923_v23 }
 0x5e4   :  { %1583 = vadd.xlane.f32.xlu1 %v1580_v24 }
 0x669   :  { %v1582_v3 = vpop.xlane.xlu0 %1581 }
 0x66a   :  { %v1585_v4 = vmul.f32 0.0078125, %v1582_v3 }
 0x66c   :  { %v1587_v0 = vadd.f32 1e-05, %v1585_v4 }
 0x66d   :  { %v1584_v5 = vpop.xlane.xlu1 %1583 }
 0x66e   :  { %2463 = vrsqrt.f32 %v1587_v0  ;;  %v1586_v6 = vmul.f32 0.0078125, %v1584_v5 }
 0x670   :  { %v1588_v7 = vadd.f32 1e-05, %v1586_v6  ;;  %v1962_v6 = vsub.s32 4, %v2745_v30 }
 0x672   :  { %2465 = vrsqrt.f32 %v1588_v7  ;;  %v1968_v7 = vsub.s32 5, %v2745_v30 }
 0x674   :  { %v1969_v12 = vrot.slane %v2913_v10, %v1968_v7 }
 0x67b   :  { %v2464_v8 = vpop.eup %2463 }
 0x67c   :  { %v1591_v11 = vmul.f32 %v2464_v8, %v2919_v36  ;;  %v1963_v8 = vrot.slane %v2913_v10, %v1962_v6 }
 0x67e   :  { %v1597_v15 = vmul.f32 %v1596_v9, %v1591_v11 }
 0x67f   :  { %v2466_v13 = vpop.eup %2465 }
 0x680   :  { %v1592_v14 = vmul.f32 %v2466_v13, %v2923_v23  ;;  %v1603_v18 = vadd.f32 %v1602_v16, %v1597_v15 }
 0x682   :  { %v1598_v17 = vmul.f32 %v1596_v9, %v1592_v14 }
 0x684   :  { %v1604_v19 = vadd.f32 %v1602_v16, %v1598_v17 }
 0x686   :  { %v1605_v20 = vpack.c.bf16 %v1604_v19, %v1603_v18 }
 0x688   :  { %1747 = vmatmul.mubr.bf16.vlgmr.msra.gmra.mxu0 %v1605_v20 }
 0x748   :  { %v1748_v28 = vpop.f32.mrf.mxu0 }
 0x749   :  { %v1749_v39 = vadd.f32 %v1748_v28, %v1627_v32 }
 0x74a   :  { %v1750_v33 = vpop.f32.mrf.mxu0 }
 0x74b   :  { %v1751_v36 = vadd.f32 %v1750_v33, %v1631_v29  ;;  %v1757_v42 = vmax.f32 %v1749_v39, 0.0 }
 0x74c   :  { %v1752_v34 = vpop.f32.mrf.mxu0 }
 0x74d   :  { %v1753_v37 = vadd.f32 %v1752_v34, %v1627_v32  ;;  %v1758_v38 = vmax.f32 %v1751_v36, 0.0 }
 0x74e   :  { %v1754_v40 = vpop.f32.mrf.mxu0 }
 0x74f   :  { %v1755_v23 = vadd.f32 %v1754_v40, %v1631_v29  ;;  %v1759_v24 = vmax.f32 %v1753_v37, 0.0 }
 0x751   :  { %v1760_v41 = vmax.f32 %v1755_v23, 0.0  ;;  %v1761_v45 = vpack.c.bf16 %v1759_v24, %v1757_v42 }
 0x753   :  { %v1762_v43 = vpack.c.bf16 %v1760_v41, %v1758_v38 }
 0x755   :  { %1927 = vmatprep.mubr.bf16.mxu1 %v1762_v43 }
 0x756   :  { %1928 = vmatmul.mubr.bf16.vlgmr.msra.gmra.mxu1 %v1761_v45 }
 0x816   :  { %v2179_v46 = vpop.f32.mrf.mxu1 }
 0x818   :  { %v2180_v35 = vpop.f32.mrf.mxu1 }
 0x819   :  { %v2181_v48 = vadd.f32 %v2180_v35, %v2179_v46 }
 0x81a   :  { %v2182_v49 = vpop.f32.mrf.mxu1 }
 0x81b   :  { %v1930_v50 = vadd.f32 %v2181_v48, %v1798_v47 }
 0x81c   :  { %v2183_v44 = vpop.f32.mrf.mxu1 }
 0x81d   :  { %v2184_v51 = vadd.f32 %v2183_v44, %v2182_v49  ;;  %v1936_v54 = vadd.f32 %v1930_v50, %v1603_v18 }
 0x81f   :  { %v1933_v1 = vadd.f32 %v2184_v51, %v1798_v47  ;;  %1938 = vadd.xlane.f32.xlu0 %v1936_v54 }
 0x821   :  { %v1937_v55 = vadd.f32 %v1933_v1, %v1604_v19 }
 0x823   :  { %1940 = vadd.xlane.f32.xlu1 %v1937_v55 }
 0x8a8   :  { %v1939_v57 = vpop.xlane.xlu0 %1938 }
 0x8a9   :  { %v1942_v58 = vmul.f32 0.0078125, %v1939_v57 }
 0x8ab   :  { %v1944_v59 = vsub.f32 %v1936_v54, %v1942_v58 }
 0x8ac   :  { %v1941_v61 = vpop.xlane.xlu1 %1940 }
 0x8ad   :  { %v1943_v53 = vmul.f32 0.0078125, %v1941_v61  ;;  %v1946_v62 = vmul.f32 %v1944_v59, %v1944_v59 }
 0x8af   :  { %v1945_v63 = vsub.f32 %v1937_v55, %v1943_v53  ;;  %1948 = vadd.xlane.f32.xlu0 %v1946_v62 }
 0x8b1   :  { %v1947_v31 = vmul.f32 %v1945_v63, %v1945_v63 }
 0x8b3   :  { %1950 = vadd.xlane.f32.xlu1 %v1947_v31 }
 0x938   :  { %v1949_v56 = vpop.xlane.xlu0 %1948 }
 0x939   :  { %v1952_v2 = vmul.f32 0.0078125, %v1949_v56 }
 0x93b   :  { %v1954_v3 = vadd.f32 1e-05, %v1952_v2 }
 0x93c   :  { %v1951_v4 = vpop.xlane.xlu1 %1950 }
 0x93d   :  { %2467 = vrsqrt.f32 %v1954_v3  ;;  %v1953_v0 = vmul.f32 0.0078125, %v1951_v4 }
 0x93f   :  { %v1955_v5 = vadd.f32 1e-05, %v1953_v0 }
 0x941   :  { %2469 = vrsqrt.f32 %v1955_v5 }
 0x94a   :  { %v2468_v9 = vpop.eup %2467 }
 0x94b   :  { %v1958_v11 = vmul.f32 %v2468_v9, %v1944_v59 }
 0x94d   :  { %v1964_v13 = vmul.f32 %v1963_v8, %v1958_v11 }
 0x94e   :  { %v2470_v14 = vpop.eup %2469 }
 0x94f   :  { %v1959_v15 = vmul.f32 %v2470_v14, %v1945_v63  ;;  %v1970_v16 = vadd.f32 %v1969_v12, %v1964_v13 }
 0x951   :  { %v1965_v17 = vmul.f32 %v1963_v8, %v1959_v15  ;;  %1972 = vst [vmem:[#allocation13] sm:$0xff] %v1970_v16 }
 0x953   :  { %v1971_v18 = vadd.f32 %v1969_v12, %v1965_v17 }
 0x955   :  { %1973 = vst [vmem:[#allocation13 + $0x8] sm:$0xff] %v1971_v18 }
 0x956   :  { %2602 = shalt.err (!%p2599_p6)
}
 0x957   :  { %1985 = dma.vmem_to_hbm [thread:$0]  %s1980_s1, 256, %s2960_s9, [#allocation4], %s2623_s14, %s2623_s14, %s2624_s15  }
 0x958   :  { %2619 = dma.done.wait [#allocation4], 256  }
 0x959   :  { %2620 = vsyncadd [#allocation4], 4294967040 }
 0x95a   :  { %1989 = vsyncpa [#allocation3], 1 }
 0x95b   :  { %1990 = vsyncpa [#allocation6], 1 }
 0x95c   :  { %1991 = vsyncpa [#allocation9], 1 }
 0x95d   :  { %1992 = vsyncpa [#allocation12], 1 }
 0x95e   :  { %1993 = vsyncpa [#allocation4], 1 }

</bundles_post_ra>
